<compile_context>
chip_gen: v6e
topology: v6e:2x2x1
jax: 0.10.0
libtpu: 0.0.40
codegen_flags: <defaults>
</compile_context>

<pallas_src>
import functools
import math

import jax
import jax.numpy as jnp
from jax.experimental import pallas as pl
from jax.experimental.pallas import tpu as pltpu

# Scoped VMEM request: raises v5e's 16 MiB default, matches v6e's 32 MiB-plus plans,
# and leaves headroom under v7x's 64 MiB physical per-TensorCore VMEM.
_VMEM_LIMIT = 48 * 1024 * 1024


def _cparams(semantics):
    return pltpu.CompilerParams(dimension_semantics=semantics,
                                vmem_limit_bytes=_VMEM_LIMIT)


# ---------------------------------------------------------------------------
# helpers
# ---------------------------------------------------------------------------
def _pick_tile(dim, candidates):
    """Largest candidate that evenly divides dim, else the full dim (single tile)."""
    for c in candidates:
        if c <= dim and dim % c == 0:
            return c
    return dim


def _heads_per_block(n_heads, d_head, hidden):
    """Pack heads so the attention block minor dim is 128-aligned (or the full H)."""
    if d_head % 128 == 0:
        return 1
    if hidden > 128 and 128 % d_head == 0:
        hpb = 128 // d_head
        if n_heads % hpb == 0:
            return hpb
    return n_heads  # block minor dim == H (always a legal full-extent block)


# ---------------------------------------------------------------------------
# QKV projection kernel: output laid out as [3, M, H] (Q / K / V planes)
# ---------------------------------------------------------------------------
def _qkv_matmul_kernel(x_ref, w_ref, b_ref, o_ref, acc_ref):
    k = pl.program_id(3)  # reduction axis (last grid dim)

    @pl.when(k == 0)
    def _():
        acc_ref[...] = jnp.zeros_like(acc_ref)

    acc_ref[...] += jnp.dot(x_ref[...], w_ref[...],
                            preferred_element_type=jnp.float32)

    @pl.when(k == pl.num_programs(3) - 1)
    def _():
        y = acc_ref[...] + b_ref[...].astype(jnp.float32)
        o_ref[...] = y.astype(o_ref.dtype)


def qkv_linear(x, w3, b3):
    """x:[M,K]; w3:[3,K,H] (stacked Wq,Wk,Wv); b3:[3,H] -> out [3,M,H] bf16.

    The stacked output lets attention() index Q/K/V column groups straight from
    BlockSpec index_maps (no XLA slice copies of the activations)."""
    M, K = x.shape
    _, _, H = w3.shape
    tm = _pick_tile(M, (512, 256, 128))
    tn = _pick_tile(H, (512, 256, 128))
    tk = _pick_tile(K, (512, 256, 128))
    grid = (3, M // tm, H // tn, K // tk)
    return pl.pallas_call(
        _qkv_matmul_kernel,
        out_shape=jax.ShapeDtypeStruct((3, M, H), jnp.bfloat16),
        grid=grid,
        in_specs=[
            pl.BlockSpec((tm, tk), lambda t, i, j, k: (i, k)),
            pl.BlockSpec((None, tk, tn), lambda t, i, j, k: (t, k, j)),
            pl.BlockSpec((None, 1, tn), lambda t, i, j, k: (t, 0, j)),
        ],
        out_specs=pl.BlockSpec((None, tm, tn), lambda t, i, j, k: (t, i, j)),
        scratch_shapes=[pltpu.VMEM((tm, tn), jnp.float32)],
        compiler_params=_cparams(("parallel", "parallel", "parallel", "arbitrary")),
    )(x.astype(jnp.bfloat16), w3.astype(jnp.bfloat16), b3.reshape(3, 1, H))


# ---------------------------------------------------------------------------
# o-proj + bias + residual + LayerNorm (fused epilogue)
# ---------------------------------------------------------------------------
def _linear_res_ln_kernel(x_ref, w_ref, b_ref, r_ref, g_ref, bb_ref, o_ref,
                          acc_ref, *, eps):
    k = pl.program_id(1)

    @pl.when(k == 0)
    def _():
        acc_ref[...] = jnp.zeros_like(acc_ref)

    acc_ref[...] += jnp.dot(x_ref[...], w_ref[...],
                            preferred_element_type=jnp.float32)

    @pl.when(k == pl.num_programs(1) - 1)
    def _():
        y = (acc_ref[...] + b_ref[...].astype(jnp.float32)
             + r_ref[...].astype(jnp.float32))
        mean = jnp.mean(y, axis=-1, keepdims=True)
        var = jnp.mean(jnp.square(y - mean), axis=-1, keepdims=True)
        y = (y - mean) * jax.lax.rsqrt(var + eps)
        o_ref[...] = (y * g_ref[...].astype(jnp.float32)
                      + bb_ref[...].astype(jnp.float32)).astype(o_ref.dtype)


def linear_residual_layernorm(x, w, b, residual, gamma, beta, eps=1e-12):
    """LayerNorm(x @ w + b + residual) fused in one kernel. x:[M,K] w:[K,N]."""
    M, K = x.shape
    _, N = w.shape
    tm = _pick_tile(M, (512, 256, 128))
    tk = _pick_tile(K, (512, 256, 128))
    grid = (M // tm, K // tk)
    return pl.pallas_call(
        functools.partial(_linear_res_ln_kernel, eps=eps),
        out_shape=jax.ShapeDtypeStruct((M, N), jnp.bfloat16),
        grid=grid,
        in_specs=[
            pl.BlockSpec((tm, tk), lambda i, k: (i, k)),
            pl.BlockSpec((tk, N), lambda i, k: (k, 0)),
            pl.BlockSpec((1, N), lambda i, k: (0, 0)),
            pl.BlockSpec((tm, N), lambda i, k: (i, 0)),
            pl.BlockSpec((1, N), lambda i, k: (0, 0)),
            pl.BlockSpec((1, N), lambda i, k: (0, 0)),
        ],
        out_specs=pl.BlockSpec((tm, N), lambda i, k: (i, 0)),
        scratch_shapes=[pltpu.VMEM((tm, N), jnp.float32)],
        compiler_params=_cparams(("parallel", "arbitrary")),
    )(x.astype(jnp.bfloat16), w.astype(jnp.bfloat16), b.reshape(1, N),
      residual.astype(jnp.bfloat16), gamma.reshape(1, N), beta.reshape(1, N))


# ---------------------------------------------------------------------------
# Fused FFN: gelu(x@W1 + b1) @ W2 accumulated over intermediate tiles,
# then bias + residual + LayerNorm in the epilogue (no [M, 4H] HBM intermediate)
# ---------------------------------------------------------------------------
def _ffn_kernel(x_ref, w1_ref, b1_ref, w2_ref, b2_ref, r_ref, g_ref, bb_ref,
                o_ref, acc_ref, *, eps):
    j = pl.program_id(1)

    @pl.when(j == 0)
    def _():
        acc_ref[...] = jnp.zeros_like(acc_ref)

    h = jnp.dot(x_ref[...], w1_ref[...], preferred_element_type=jnp.float32)
    h = h + b1_ref[...].astype(jnp.float32)
    # TODO(synk): HF BERT default GELU is erf-based; tanh approximation used here.
    h = jax.nn.gelu(h, approximate=True)
    acc_ref[...] += jnp.dot(h.astype(jnp.bfloat16), w2_ref[...],
                            preferred_element_type=jnp.float32)

    @pl.when(j == pl.num_programs(1) - 1)
    def _():
        y = (acc_ref[...] + b2_ref[...].astype(jnp.float32)
             + r_ref[...].astype(jnp.float32))
        mean = jnp.mean(y, axis=-1, keepdims=True)
        var = jnp.mean(jnp.square(y - mean), axis=-1, keepdims=True)
        y = (y - mean) * jax.lax.rsqrt(var + eps)
        o_ref[...] = (y * g_ref[...].astype(jnp.float32)
                      + bb_ref[...].astype(jnp.float32)).astype(o_ref.dtype)


def ffn_residual_layernorm(x, w1, b1, w2, b2, residual, gamma, beta, eps=1e-12):
    """LayerNorm(gelu(x@W1 + b1)@W2 + b2 + residual). x:[M,H] w1:[H,I] w2:[I,H]."""
    M, H = x.shape
    _, I = w1.shape
    tm = _pick_tile(M, (256, 128))
    ti = _pick_tile(I, (512, 256, 128))
    grid = (M // tm, I // ti)
    return pl.pallas_call(
        functools.partial(_ffn_kernel, eps=eps),
        out_shape=jax.ShapeDtypeStruct((M, H), jnp.bfloat16),
        grid=grid,
        in_specs=[
            pl.BlockSpec((tm, H), lambda i, j: (i, 0)),
            pl.BlockSpec((H, ti), lambda i, j: (0, j)),
            pl.BlockSpec((1, ti), lambda i, j: (0, j)),
            pl.BlockSpec((ti, H), lambda i, j: (j, 0)),
            pl.BlockSpec((1, H), lambda i, j: (0, 0)),
            pl.BlockSpec((tm, H), lambda i, j: (i, 0)),
            pl.BlockSpec((1, H), lambda i, j: (0, 0)),
            pl.BlockSpec((1, H), lambda i, j: (0, 0)),
        ],
        out_specs=pl.BlockSpec((tm, H), lambda i, j: (i, 0)),
        scratch_shapes=[pltpu.VMEM((tm, H), jnp.float32)],
        compiler_params=_cparams(("parallel", "arbitrary")),
    )(x.astype(jnp.bfloat16), w1.astype(jnp.bfloat16), b1.reshape(1, I),
      w2.astype(jnp.bfloat16), b2.reshape(1, H),
      residual.astype(jnp.bfloat16), gamma.reshape(1, H), beta.reshape(1, H))


# ---------------------------------------------------------------------------
# Embedding add (word + pos + type) + LayerNorm fused
# ---------------------------------------------------------------------------
def _emb_ln_kernel(we_ref, pe_ref, te_ref, g_ref, b_ref, o_ref, *, eps):
    x = (we_ref[...].astype(jnp.float32) + pe_ref[...].astype(jnp.float32)
         + te_ref[...].astype(jnp.float32))
    mean = jnp.mean(x, axis=-1, keepdims=True)
    var = jnp.mean(jnp.square(x - mean), axis=-1, keepdims=True)
    y = (x - mean) * jax.lax.rsqrt(var + eps)
    o_ref[...] = (y * g_ref[...].astype(jnp.float32)
                  + b_ref[...].astype(jnp.float32)).astype(o_ref.dtype)


def embeddings_layernorm(we, pe, te, gamma, beta, eps=1e-12):
    """LayerNorm(word_emb + pos_emb + type_emb), row-tiled. Inputs [M,H] f32."""
    M, H = we.shape
    tm = _pick_tile(M, (512, 256, 128))
    return pl.pallas_call(
        functools.partial(_emb_ln_kernel, eps=eps),
        out_shape=jax.ShapeDtypeStruct((M, H), jnp.bfloat16),
        grid=(M // tm,),
        in_specs=[
            pl.BlockSpec((tm, H), lambda i: (i, 0)),
            pl.BlockSpec((tm, H), lambda i: (i, 0)),
            pl.BlockSpec((tm, H), lambda i: (i, 0)),
            pl.BlockSpec((1, H), lambda i: (0, 0)),
            pl.BlockSpec((1, H), lambda i: (0, 0)),
        ],
        out_specs=pl.BlockSpec((tm, H), lambda i: (i, 0)),
        compiler_params=_cparams(("parallel",)),
    )(we, pe, te, gamma.reshape(1, H), beta.reshape(1, H))


# ---------------------------------------------------------------------------
# Attention (head-group blocks, query-tiled, Q/K/V selected via index_map)
# ---------------------------------------------------------------------------
def _attention_kernel(q_ref, k_ref, v_ref, m_ref, o_ref, *, scale, d_head, hpb):
    # q: [tq, blk]; k/v: [S, blk]; mask: [1, S] f32 additive.
    q_all = q_ref[...]
    k_all = k_ref[...]
    v_all = v_ref[...]
    m = m_ref[...].astype(jnp.float32)
    outs = []
    for h in range(hpb):  # small static loop over the heads in this group
        lo, hi = h * d_head, (h + 1) * d_head
        q = q_all[:, lo:hi]
        k = k_all[:, lo:hi]
        v = v_all[:, lo:hi]
        # q @ k^T via dot_general transposed contraction (no in-kernel k.T copy)
        s = jax.lax.dot_general(q, k, (((1,), (1,)), ((), ())),
                                preferred_element_type=jnp.float32) * scale
        s = s + m                                   # broadcast over query rows, f32
        s = s - jnp.max(s, axis=-1, keepdims=True)  # stable softmax
        p = jnp.exp(s)
        # TODO(synk): approximate EUP reciprocal (~1e-3 rel err) vs exact fp32 softmax.
        p = p * pl.reciprocal(jnp.sum(p, axis=-1, keepdims=True), approx=True)
        outs.append(jnp.dot(p.astype(v.dtype), v,
                            preferred_element_type=jnp.float32))
    o_ref[...] = jnp.concatenate(outs, axis=-1).astype(o_ref.dtype)


def attention(qkv, add_mask, scale, num_heads):
    """qkv: [3, B, S, H] bf16 (stacked Q/K/V); add_mask: [B, 1, S] f32 additive."""
    _, B, S, H = qkv.shape
    d_head = H // num_heads
    hpb = _heads_per_block(num_heads, d_head, H)
    n_groups = num_heads // hpb
    blk = hpb * d_head
    tq = _pick_tile(S, (256, 128))  # query-block axis: bounds scores VMEM, adds parallel work (v7x 2 TCs)
    grid = (B, S // tq, n_groups)
    # TODO(synk): full-KV softmax per query block; a flash-style online-softmax KV tiling
    # would be needed for very long sequences.
    return pl.pallas_call(
        functools.partial(_attention_kernel, scale=scale, d_head=d_head, hpb=hpb),
        out_shape=jax.ShapeDtypeStruct((B, S, H), jnp.bfloat16),
        grid=grid,
        in_specs=[
            pl.BlockSpec((None, None, tq, blk), lambda b, qi, g: (0, b, qi, g)),
            pl.BlockSpec((None, None, S, blk), lambda b, qi, g: (1, b, 0, g)),
            pl.BlockSpec((None, None, S, blk), lambda b, qi, g: (2, b, 0, g)),
            pl.BlockSpec((None, 1, S), lambda b, qi, g: (b, 0, 0)),
        ],
        out_specs=pl.BlockSpec((None, tq, blk), lambda b, qi, g: (b, qi, g)),
        compiler_params=_cparams(("parallel", "parallel", "parallel")),
    )(qkv, qkv, qkv, add_mask)


# ---------------------------------------------------------------------------
# Pooler (tanh) + classifier fused
# ---------------------------------------------------------------------------
def _pooler_cls_kernel(x_ref, wp_ref, bp_ref, wc_ref, bc_ref, o_ref):
    x = x_ref[...].astype(jnp.float32)
    pooled = jnp.tanh(
        jnp.dot(x, wp_ref[...].astype(jnp.float32),
                preferred_element_type=jnp.float32) + bp_ref[...])
    logits = jnp.dot(pooled, wc_ref[...].astype(jnp.float32),
                     preferred_element_type=jnp.float32) + bc_ref[...]
    o_ref[...] = logits


def pooler_classifier(cls_tok, wp, bp, wc, bc):
    """logits = (tanh(cls @ Wp + bp)) @ Wc + bc, fused into one tiny kernel."""
    B, H = cls_tok.shape
    L = wc.shape[1]
    return pl.pallas_call(
        _pooler_cls_kernel,
        out_shape=jax.ShapeDtypeStruct((B, L), jnp.float32),
        grid=(1,),
        in_specs=[
            pl.BlockSpec((B, H), lambda i: (0, 0)),
            pl.BlockSpec((H, H), lambda i: (0, 0)),
            pl.BlockSpec((1, H), lambda i: (0, 0)),
            pl.BlockSpec((H, L), lambda i: (0, 0)),
            pl.BlockSpec((1, L), lambda i: (0, 0)),
        ],
        out_specs=pl.BlockSpec((B, L), lambda i: (0, 0)),
        compiler_params=_cparams(("arbitrary",)),
    )(cls_tok.astype(jnp.float32), wp, bp.reshape(1, H), wc, bc.reshape(1, L))


# ---------------------------------------------------------------------------
# Parameter init (deterministic, synthetic; weights stored bf16, norms/bias f32)
# ---------------------------------------------------------------------------
def init_params(key, cfg):
    keys = iter(jax.random.split(key, 1024))
    H = cfg["hidden_size"]
    I = cfg["intermediate_size"]

    def w(shape, dtype=jnp.bfloat16):
        return (jax.random.normal(next(keys), shape, jnp.float32) * 0.02).astype(dtype)

    params = {
        "word_emb": w((cfg["vocab_size"], H), jnp.float32),
        "pos_emb": w((cfg["max_position"], H), jnp.float32),
        "type_emb": w((cfg["type_vocab_size"], H), jnp.float32),
        "emb_ln_g": jnp.ones((H,), jnp.float32),
        "emb_ln_b": jnp.zeros((H,), jnp.float32),
        "layers": [],
        "pooler_w": w((H, H), jnp.float32),
        "pooler_b": jnp.zeros((H,), jnp.float32),
        "cls_w": w((H, cfg["num_labels"]), jnp.float32),
        "cls_b": jnp.zeros((cfg["num_labels"],), jnp.float32),
    }
    for _ in range(cfg["num_layers"]):
        params["layers"].append({
            "qkv_w": w((3, H, H)),                  # stacked [Wq, Wk, Wv]
            "qkv_b": jnp.zeros((3, H), jnp.float32),
            "o_w": w((H, H)),
            "o_b": jnp.zeros((H,), jnp.float32),
            "ln1_g": jnp.ones((H,), jnp.float32),
            "ln1_b": jnp.zeros((H,), jnp.float32),
            "fc1_w": w((H, I)),
            "fc1_b": jnp.zeros((I,), jnp.float32),
            "fc2_w": w((I, H)),
            "fc2_b": jnp.zeros((H,), jnp.float32),
            "ln2_g": jnp.ones((H,), jnp.float32),
            "ln2_b": jnp.zeros((H,), jnp.float32),
        })
    return params


# ---------------------------------------------------------------------------
# Forward pass (BertModel -> pooled output -> dropout(identity) -> classifier)
# ---------------------------------------------------------------------------
def bert_classifier_forward(params, input_ids, attention_mask, token_type_ids,
                            position_ids, cfg):
    B, S = input_ids.shape
    H = cfg["hidden_size"]
    nH = cfg["num_heads"]
    dH = H // nH

    # --- embeddings: gathers in XLA, add + LayerNorm fused in Pallas ---
    we = jnp.take(params["word_emb"], input_ids, axis=0).reshape(B * S, H)
    pe = jnp.take(params["pos_emb"], position_ids, axis=0).reshape(B * S, H)
    te = jnp.take(params["type_emb"], token_type_ids, axis=0).reshape(B * S, H)
    x = embeddings_layernorm(we, pe, te, params["emb_ln_g"], params["emb_ln_b"])
    # dropout: identity (eval)

    # BERT extended additive attention mask (kept in f32 through softmax)
    add_mask = ((1.0 - attention_mask.astype(jnp.float32)) * -10000.0).reshape(B, 1, S)
    scale = 1.0 / math.sqrt(dH)

    # --- transformer encoder layers ---
    for layer in params["layers"]:
        qkv = qkv_linear(x, layer["qkv_w"], layer["qkv_b"])     # [3, B*S, H] bf16
        qkv = qkv.reshape(3, B, S, H)                           # free (contiguous) reshape
        ctx = attention(qkv, add_mask, scale, nH).reshape(B * S, H)
        # o-proj + bias + residual + LayerNorm fused
        x = linear_residual_layernorm(ctx, layer["o_w"], layer["o_b"], x,
                                      layer["ln1_g"], layer["ln1_b"])
        # fc1 + GELU + fc2 + bias + residual + LayerNorm fused (no 4H HBM intermediate)
        x = ffn_residual_layernorm(x, layer["fc1_w"], layer["fc1_b"],
                                   layer["fc2_w"], layer["fc2_b"], x,
                                   layer["ln2_g"], layer["ln2_b"])

    # --- pooler (tanh(W h[:,0] + b)) + dropout(identity) + classifier, fused ---
    cls_tok = x.reshape(B, S, H)[:, 0, :]
    logits = pooler_classifier(cls_tok, params["pooler_w"], params["pooler_b"],
                               params["cls_w"], params["cls_b"])
    # labels is None -> return logits (no CrossEntropyLoss branch)
    return logits


# ---------------------------------------------------------------------------
if __name__ == "__main__":
    cfg = dict(
        vocab_size=100,
        hidden_size=32,
        num_layers=2,
        num_heads=2,
        intermediate_size=64,
        max_position=16,
        type_vocab_size=2,
        num_labels=3,
    )
    B, S = 2, 8

    root = jax.random.PRNGKey(0)
    k_param, k_ids = jax.random.split(root)

    params = init_params(k_param, cfg)

    input_ids = jax.random.randint(k_ids, (B, S), 0, cfg["vocab_size"], dtype=jnp.int32)
    attention_mask = jnp.ones((B, S), jnp.int32).at[1, 6:].set(0)   # pad last 2 tokens of batch 1
    token_type_ids = jnp.zeros((B, S), jnp.int32)
    position_ids = jnp.broadcast_to(jnp.arange(S, dtype=jnp.int32), (B, S))

    fwd = jax.jit(functools.partial(bert_classifier_forward, cfg=cfg))
    logits = fwd(params, input_ids, attention_mask, token_type_ids, position_ids)
    logits = jax.block_until_ready(logits)

    assert logits.shape == (B, cfg["num_labels"])
    assert bool(jnp.all(jnp.isfinite(logits)))
    print("KERNEL_OK")
</pallas_src>

<mosaic_0001>
module attributes {stable_mosaic.version = 11 : i64} {
  func.func @_emb_ln_kernel(%arg0: i32, %arg1: memref<16x32xf32, #tpu.memory_space<vmem>>, %arg2: memref<16x32xf32, #tpu.memory_space<vmem>>, %arg3: memref<16x32xf32, #tpu.memory_space<vmem>>, %arg4: memref<1x32xf32, #tpu.memory_space<vmem>>, %arg5: memref<1x32xf32, #tpu.memory_space<vmem>>, %arg6: memref<16x32xbf16, #tpu.memory_space<vmem>>) attributes {dimension_semantics = [#tpu.dimension_semantics<parallel>], iteration_bounds = array<i64: 1>, scalar_prefetch = 0 : i64, scratch_operands = 0 : i64, tpu.core_type = #tpu.core_type<tc>, window_params = [{transform_indices = @transform_0, window_bounds = array<i64: 16, 32>}, {transform_indices = @transform_1, window_bounds = array<i64: 16, 32>}, {transform_indices = @transform_2, window_bounds = array<i64: 16, 32>}, {pipeline_mode = #tpu.pipeline_mode<synchronous>, transform_indices = @transform_3, window_bounds = array<i64: 1, 32>}, {pipeline_mode = #tpu.pipeline_mode<synchronous>, transform_indices = @transform_4, window_bounds = array<i64: 1, 32>}, {transform_indices = @transform_5, window_bounds = array<i64: 16, 32>}]} {
    %c0 = arith.constant 0 : index
    %c0_0 = arith.constant 0 : index
    %0 = vector.load %arg1[%c0, %c0_0] : memref<16x32xf32, #tpu.memory_space<vmem>>, vector<16x32xf32>
    %c0_1 = arith.constant 0 : index
    %c0_2 = arith.constant 0 : index
    %1 = vector.load %arg2[%c0_1, %c0_2] : memref<16x32xf32, #tpu.memory_space<vmem>>, vector<16x32xf32>
    %2 = arith.addf %0, %1 : vector<16x32xf32>
    %c0_3 = arith.constant 0 : index
    %c0_4 = arith.constant 0 : index
    %3 = vector.load %arg3[%c0_3, %c0_4] : memref<16x32xf32, #tpu.memory_space<vmem>>, vector<16x32xf32>
    %4 = arith.addf %2, %3 : vector<16x32xf32>
    %cst = arith.constant dense<0.000000e+00> : vector<16xf32>
    %5 = vector.multi_reduction <add>, %4, %cst [1] : vector<16x32xf32> to vector<16xf32>
    %6 = vector.shape_cast %5 : vector<16xf32> to vector<16x1xf32>
    %cst_5 = arith.constant 3.200000e+01 : f32
    %7 = vector.broadcast %cst_5 : f32 to vector<16x1xf32>
    %8 = arith.divf %6, %7 : vector<16x1xf32>
    %9 = vector.broadcast %8 : vector<16x1xf32> to vector<16x32xf32>
    %10 = arith.subf %4, %9 : vector<16x32xf32>
    %11 = arith.mulf %10, %10 : vector<16x32xf32>
    %cst_6 = arith.constant dense<0.000000e+00> : vector<16xf32>
    %12 = vector.multi_reduction <add>, %11, %cst_6 [1] : vector<16x32xf32> to vector<16xf32>
    %13 = vector.shape_cast %12 : vector<16xf32> to vector<16x1xf32>
    %cst_7 = arith.constant 3.200000e+01 : f32
    %14 = vector.broadcast %cst_7 : f32 to vector<16x1xf32>
    %15 = arith.divf %13, %14 : vector<16x1xf32>
    %16 = vector.broadcast %8 : vector<16x1xf32> to vector<16x32xf32>
    %17 = arith.subf %4, %16 : vector<16x32xf32>
    %cst_8 = arith.constant 9.99999996E-13 : f32
    %18 = vector.broadcast %cst_8 : f32 to vector<16x1xf32>
    %19 = arith.addf %15, %18 : vector<16x1xf32>
    %20 = math.rsqrt %19 : vector<16x1xf32>
    %21 = vector.broadcast %20 : vector<16x1xf32> to vector<16x32xf32>
    %22 = arith.mulf %17, %21 : vector<16x32xf32>
    %c0_9 = arith.constant 0 : index
    %c0_10 = arith.constant 0 : index
    %23 = vector.load %arg4[%c0_9, %c0_10] : memref<1x32xf32, #tpu.memory_space<vmem>>, vector<1x32xf32>
    %24 = vector.broadcast %23 : vector<1x32xf32> to vector<16x32xf32>
    %25 = arith.mulf %22, %24 : vector<16x32xf32>
    %c0_11 = arith.constant 0 : index
    %c0_12 = arith.constant 0 : index
    %26 = vector.load %arg5[%c0_11, %c0_12] : memref<1x32xf32, #tpu.memory_space<vmem>>, vector<1x32xf32>
    %27 = vector.broadcast %26 : vector<1x32xf32> to vector<16x32xf32>
    %28 = arith.addf %25, %27 : vector<16x32xf32>
    %29 = arith.truncf %28 : vector<16x32xf32> to vector<16x32xbf16>
    %c0_13 = arith.constant 0 : index
    %c0_14 = arith.constant 0 : index
    %30 = vector.load %arg6[%c0_13, %c0_14] : memref<16x32xbf16, #tpu.memory_space<vmem>>, vector<16x32xbf16>
    tpu.vector_store %arg6[%c0_13, %c0_14], %29 {strides = array<i32>} : memref<16x32xbf16, #tpu.memory_space<vmem>>, vector<16x32xbf16>,
    return
  }
  func.func @transform_0(%arg0: i32) -> (i32, i32) {
    %c0_i32 = arith.constant 0 : i32
    %c0_i32_0 = arith.constant 0 : i32
    return %arg0, %c0_i32 : i32, i32
  }
  func.func @transform_1(%arg0: i32) -> (i32, i32) {
    %c0_i32 = arith.constant 0 : i32
    %c0_i32_0 = arith.constant 0 : i32
    return %arg0, %c0_i32 : i32, i32
  }
  func.func @transform_2(%arg0: i32) -> (i32, i32) {
    %c0_i32 = arith.constant 0 : i32
    %c0_i32_0 = arith.constant 0 : i32
    return %arg0, %c0_i32 : i32, i32
  }
  func.func @transform_3(%arg0: i32) -> (i32, i32) {
    %c0_i32 = arith.constant 0 : i32
    %c0_i32_0 = arith.constant 0 : i32
    %c0_i32_1 = arith.constant 0 : i32
    return %c0_i32, %c0_i32_0 : i32, i32
  }
  func.func @transform_4(%arg0: i32) -> (i32, i32) {
    %c0_i32 = arith.constant 0 : i32
    %c0_i32_0 = arith.constant 0 : i32
    %c0_i32_1 = arith.constant 0 : i32
    return %c0_i32, %c0_i32_0 : i32, i32
  }
  func.func @transform_5(%arg0: i32) -> (i32, i32) {
    %c0_i32 = arith.constant 0 : i32
    %c0_i32_0 = arith.constant 0 : i32
    return %arg0, %c0_i32 : i32, i32
  }
}

module attributes {stable_mosaic.version = 11 : i64} {
  func.func @_qkv_matmul_kernel(%arg0: i32, %arg1: i32, %arg2: i32, %arg3: i32, %arg4: memref<16x32xbf16, #tpu.memory_space<vmem>>, %arg5: memref<1x32x32xbf16, #tpu.memory_space<vmem>>, %arg6: memref<1x1x32xf32, #tpu.memory_space<vmem>>, %arg7: memref<1x16x32xbf16, #tpu.memory_space<vmem>>, %arg8: memref<16x32xf32, #tpu.memory_space<vmem>>) attributes {dimension_semantics = [#tpu.dimension_semantics<parallel>, #tpu.dimension_semantics<parallel>, #tpu.dimension_semantics<parallel>, #tpu.dimension_semantics<arbitrary>], iteration_bounds = array<i64: 3, 1, 1, 1>, scalar_prefetch = 0 : i64, scratch_operands = 1 : i64, tpu.core_type = #tpu.core_type<tc>, window_params = [{transform_indices = @transform_0, window_bounds = array<i64: 16, 32>}, {transform_indices = @transform_1, window_bounds = array<i64: 1, 32, 32>}, {transform_indices = @transform_2, window_bounds = array<i64: 1, 1, 32>}, {transform_indices = @transform_3, window_bounds = array<i64: 1, 16, 32>}]} {
    %c0_i32 = arith.constant 0 : i32
    %0 = arith.cmpi eq, %arg3, %c0_i32 : i32
    %1 = arith.extui %0 : i1 to i32
    %c0_i32_0 = arith.constant 0 : i32
    %2 = arith.cmpi ne, %1, %c0_i32_0 : i32
    scf.if %2 {
      %cst_11 = arith.constant 0.000000e+00 : f32
      %13 = vector.broadcast %cst_11 : f32 to vector<16x32xf32>
      %c0_12 = arith.constant 0 : index
      %c0_13 = arith.constant 0 : index
      %14 = vector.load %arg8[%c0_12, %c0_13] : memref<16x32xf32, #tpu.memory_space<vmem>>, vector<16x32xf32>
      tpu.vector_store %arg8[%c0_12, %c0_13], %13 {strides = array<i32>} : memref<16x32xf32, #tpu.memory_space<vmem>>, vector<16x32xf32>,
    } else {
    }
    %c0 = arith.constant 0 : index
    %c0_1 = arith.constant 0 : index
    %3 = vector.load %arg8[%c0, %c0_1] : memref<16x32xf32, #tpu.memory_space<vmem>>, vector<16x32xf32>
    %c0_2 = arith.constant 0 : index
    %c0_3 = arith.constant 0 : index
    %4 = vector.load %arg4[%c0_2, %c0_3] : memref<16x32xbf16, #tpu.memory_space<vmem>>, vector<16x32xbf16>
    %c0_4 = arith.constant 0 : index
    %c0_5 = arith.constant 0 : index
    %c0_6 = arith.constant 0 : index
    %5 = vector.load %arg5[%c0_4, %c0_5, %c0_6] : memref<1x32x32xbf16, #tpu.memory_space<vmem>>, vector<1x32x32xbf16>
    %6 = vector.shape_cast %5 : vector<1x32x32xbf16> to vector<32x32xbf16>
    %cst = arith.constant dense<0.000000e+00> : vector<16x32xf32>
    %7 = tpu.matmul %4, %6, %cst {dimension_numbers = #tpu.dot_dimension_numbers<[1], [0], [0], [1], [0, 0, 1, 1], [], []>} : vector<16x32xbf16>, vector<32x32xbf16>, vector<16x32xf32> -> vector<16x32xf32>
    %8 = arith.addf %3, %7 : vector<16x32xf32>
    %c0_7 = arith.constant 0 : index
    %c0_8 = arith.constant 0 : index
    %9 = vector.load %arg8[%c0_7, %c0_8] : memref<16x32xf32, #tpu.memory_space<vmem>>, vector<16x32xf32>
    tpu.vector_store %arg8[%c0_7, %c0_8], %8 {strides = array<i32>} : memref<16x32xf32, #tpu.memory_space<vmem>>, vector<16x32xf32>,
    %c0_i32_9 = arith.constant 0 : i32
    %10 = arith.cmpi eq, %arg3, %c0_i32_9 : i32
    %11 = arith.extui %10 : i1 to i32
    %c0_i32_10 = arith.constant 0 : i32
    %12 = arith.cmpi ne, %11, %c0_i32_10 : i32
    scf.if %12 {
      %c0_11 = arith.constant 0 : index
      %c0_12 = arith.constant 0 : index
      %13 = vector.load %arg8[%c0_11, %c0_12] : memref<16x32xf32, #tpu.memory_space<vmem>>, vector<16x32xf32>
      %c0_13 = arith.constant 0 : index
      %c0_14 = arith.constant 0 : index
      %c0_15 = arith.constant 0 : index
      %14 = vector.load %arg6[%c0_13, %c0_14, %c0_15] : memref<1x1x32xf32, #tpu.memory_space<vmem>>, vector<1x1x32xf32>
      %15 = vector.shape_cast %14 : vector<1x1x32xf32> to vector<1x32xf32>
      %16 = vector.broadcast %15 : vector<1x32xf32> to vector<16x32xf32>
      %17 = arith.addf %13, %16 : vector<16x32xf32>
      %18 = arith.truncf %17 : vector<16x32xf32> to vector<16x32xbf16>
      %c0_16 = arith.constant 0 : index
      %c0_17 = arith.constant 0 : index
      %c0_18 = arith.constant 0 : index
      %19 = vector.load %arg7[%c0_16, %c0_17, %c0_18] : memref<1x16x32xbf16, #tpu.memory_space<vmem>>, vector<1x16x32xbf16>
      %20 = vector.shape_cast %19 : vector<1x16x32xbf16> to vector<16x32xbf16>
      %21 = vector.shape_cast %18 : vector<16x32xbf16> to vector<1x16x32xbf16>
      tpu.vector_store %arg7[%c0_16, %c0_17, %c0_18], %21 {strides = array<i32>} : memref<1x16x32xbf16, #tpu.memory_space<vmem>>, vector<1x16x32xbf16>,
    } else {
    }
    return
  }
  func.func @transform_0(%arg0: i32, %arg1: i32, %arg2: i32, %arg3: i32) -> (i32, i32) {
    %c0_i32 = arith.constant 0 : i32
    return %arg1, %arg3 : i32, i32
  }
  func.func @transform_1(%arg0: i32, %arg1: i32, %arg2: i32, %arg3: i32) -> (i32, i32, i32) {
    %c0_i32 = arith.constant 0 : i32
    return %arg0, %arg3, %arg2 : i32, i32, i32
  }
  func.func @transform_2(%arg0: i32, %arg1: i32, %arg2: i32, %arg3: i32) -> (i32, i32, i32) {
    %c0_i32 = arith.constant 0 : i32
    %c0_i32_0 = arith.constant 0 : i32
    return %arg0, %c0_i32, %arg2 : i32, i32, i32
  }
  func.func @transform_3(%arg0: i32, %arg1: i32, %arg2: i32, %arg3: i32) -> (i32, i32, i32) {
    %c0_i32 = arith.constant 0 : i32
    return %arg0, %arg1, %arg2 : i32, i32, i32
  }
}

module attributes {stable_mosaic.version = 11 : i64} {
  func.func @_linear_res_ln_kernel(%arg0: i32, %arg1: i32, %arg2: memref<16x32xbf16, #tpu.memory_space<vmem>>, %arg3: memref<32x32xbf16, #tpu.memory_space<vmem>>, %arg4: memref<1x32xf32, #tpu.memory_space<vmem>>, %arg5: memref<16x32xbf16, #tpu.memory_space<vmem>>, %arg6: memref<1x32xf32, #tpu.memory_space<vmem>>, %arg7: memref<1x32xf32, #tpu.memory_space<vmem>>, %arg8: memref<16x32xbf16, #tpu.memory_space<vmem>>, %arg9: memref<16x32xf32, #tpu.memory_space<vmem>>) attributes {dimension_semantics = [#tpu.dimension_semantics<parallel>, #tpu.dimension_semantics<arbitrary>], iteration_bounds = array<i64: 1, 1>, scalar_prefetch = 0 : i64, scratch_operands = 1 : i64, tpu.core_type = #tpu.core_type<tc>, window_params = [{transform_indices = @transform_0, window_bounds = array<i64: 16, 32>}, {transform_indices = @transform_1, window_bounds = array<i64: 32, 32>}, {pipeline_mode = #tpu.pipeline_mode<synchronous>, transform_indices = @transform_2, window_bounds = array<i64: 1, 32>}, {transform_indices = @transform_3, window_bounds = array<i64: 16, 32>}, {pipeline_mode = #tpu.pipeline_mode<synchronous>, transform_indices = @transform_4, window_bounds = array<i64: 1, 32>}, {pipeline_mode = #tpu.pipeline_mode<synchronous>, transform_indices = @transform_5, window_bounds = array<i64: 1, 32>}, {transform_indices = @transform_6, window_bounds = array<i64: 16, 32>}]} {
    %c0_i32 = arith.constant 0 : i32
    %0 = arith.cmpi eq, %arg1, %c0_i32 : i32
    %1 = arith.extui %0 : i1 to i32
    %c0_i32_0 = arith.constant 0 : i32
    %2 = arith.cmpi ne, %1, %c0_i32_0 : i32
    scf.if %2 {
      %cst_10 = arith.constant 0.000000e+00 : f32
      %12 = vector.broadcast %cst_10 : f32 to vector<16x32xf32>
      %c0_11 = arith.constant 0 : index
      %c0_12 = arith.constant 0 : index
      %13 = vector.load %arg9[%c0_11, %c0_12] : memref<16x32xf32, #tpu.memory_space<vmem>>, vector<16x32xf32>
      tpu.vector_store %arg9[%c0_11, %c0_12], %12 {strides = array<i32>} : memref<16x32xf32, #tpu.memory_space<vmem>>, vector<16x32xf32>,
    } else {
    }
    %c0 = arith.constant 0 : index
    %c0_1 = arith.constant 0 : index
    %3 = vector.load %arg9[%c0, %c0_1] : memref<16x32xf32, #tpu.memory_space<vmem>>, vector<16x32xf32>
    %c0_2 = arith.constant 0 : index
    %c0_3 = arith.constant 0 : index
    %4 = vector.load %arg2[%c0_2, %c0_3] : memref<16x32xbf16, #tpu.memory_space<vmem>>, vector<16x32xbf16>
    %c0_4 = arith.constant 0 : index
    %c0_5 = arith.constant 0 : index
    %5 = vector.load %arg3[%c0_4, %c0_5] : memref<32x32xbf16, #tpu.memory_space<vmem>>, vector<32x32xbf16>
    %cst = arith.constant dense<0.000000e+00> : vector<16x32xf32>
    %6 = tpu.matmul %4, %5, %cst {dimension_numbers = #tpu.dot_dimension_numbers<[1], [0], [0], [1], [0, 0, 1, 1], [], []>} : vector<16x32xbf16>, vector<32x32xbf16>, vector<16x32xf32> -> vector<16x32xf32>
    %7 = arith.addf %3, %6 : vector<16x32xf32>
    %c0_6 = arith.constant 0 : index
    %c0_7 = arith.constant 0 : index
    %8 = vector.load %arg9[%c0_6, %c0_7] : memref<16x32xf32, #tpu.memory_space<vmem>>, vector<16x32xf32>
    tpu.vector_store %arg9[%c0_6, %c0_7], %7 {strides = array<i32>} : memref<16x32xf32, #tpu.memory_space<vmem>>, vector<16x32xf32>,
    %c0_i32_8 = arith.constant 0 : i32
    %9 = arith.cmpi eq, %arg1, %c0_i32_8 : i32
    %10 = arith.extui %9 : i1 to i32
    %c0_i32_9 = arith.constant 0 : i32
    %11 = arith.cmpi ne, %10, %c0_i32_9 : i32
    scf.if %11 {
      %c0_10 = arith.constant 0 : index
      %c0_11 = arith.constant 0 : index
      %12 = vector.load %arg9[%c0_10, %c0_11] : memref<16x32xf32, #tpu.memory_space<vmem>>, vector<16x32xf32>
      %c0_12 = arith.constant 0 : index
      %c0_13 = arith.constant 0 : index
      %13 = vector.load %arg4[%c0_12, %c0_13] : memref<1x32xf32, #tpu.memory_space<vmem>>, vector<1x32xf32>
      %14 = vector.broadcast %13 : vector<1x32xf32> to vector<16x32xf32>
      %15 = arith.addf %12, %14 : vector<16x32xf32>
      %c0_14 = arith.constant 0 : index
      %c0_15 = arith.constant 0 : index
      %16 = vector.load %arg5[%c0_14, %c0_15] : memref<16x32xbf16, #tpu.memory_space<vmem>>, vector<16x32xbf16>
      %17 = arith.extf %16 : vector<16x32xbf16> to vector<16x32xf32>
      %18 = arith.addf %15, %17 : vector<16x32xf32>
      %cst_16 = arith.constant dense<0.000000e+00> : vector<16xf32>
      %19 = vector.multi_reduction <add>, %18, %cst_16 [1] : vector<16x32xf32> to vector<16xf32>
      %20 = vector.shape_cast %19 : vector<16xf32> to vector<16x1xf32>
      %cst_17 = arith.constant 3.200000e+01 : f32
      %21 = vector.broadcast %cst_17 : f32 to vector<16x1xf32>
      %22 = arith.divf %20, %21 : vector<16x1xf32>
      %23 = vector.broadcast %22 : vector<16x1xf32> to vector<16x32xf32>
      %24 = arith.subf %18, %23 : vector<16x32xf32>
      %25 = arith.mulf %24, %24 : vector<16x32xf32>
      %cst_18 = arith.constant dense<0.000000e+00> : vector<16xf32>
      %26 = vector.multi_reduction <add>, %25, %cst_18 [1] : vector<16x32xf32> to vector<16xf32>
      %27 = vector.shape_cast %26 : vector<16xf32> to vector<16x1xf32>
      %cst_19 = arith.constant 3.200000e+01 : f32
      %28 = vector.broadcast %cst_19 : f32 to vector<16x1xf32>
      %29 = arith.divf %27, %28 : vector<16x1xf32>
      %30 = vector.broadcast %22 : vector<16x1xf32> to vector<16x32xf32>
      %31 = arith.subf %18, %30 : vector<16x32xf32>
      %cst_20 = arith.constant 9.99999996E-13 : f32
      %32 = vector.broadcast %cst_20 : f32 to vector<16x1xf32>
      %33 = arith.addf %29, %32 : vector<16x1xf32>
      %34 = math.rsqrt %33 : vector<16x1xf32>
      %35 = vector.broadcast %34 : vector<16x1xf32> to vector<16x32xf32>
      %36 = arith.mulf %31, %35 : vector<16x32xf32>
      %c0_21 = arith.constant 0 : index
      %c0_22 = arith.constant 0 : index
      %37 = vector.load %arg6[%c0_21, %c0_22] : memref<1x32xf32, #tpu.memory_space<vmem>>, vector<1x32xf32>
      %38 = vector.broadcast %37 : vector<1x32xf32> to vector<16x32xf32>
      %39 = arith.mulf %36, %38 : vector<16x32xf32>
      %c0_23 = arith.constant 0 : index
      %c0_24 = arith.constant 0 : index
      %40 = vector.load %arg7[%c0_23, %c0_24] : memref<1x32xf32, #tpu.memory_space<vmem>>, vector<1x32xf32>
      %41 = vector.broadcast %40 : vector<1x32xf32> to vector<16x32xf32>
      %42 = arith.addf %39, %41 : vector<16x32xf32>
      %43 = arith.truncf %42 : vector<16x32xf32> to vector<16x32xbf16>
      %c0_25 = arith.constant 0 : index
      %c0_26 = arith.constant 0 : index
      %44 = vector.load %arg8[%c0_25, %c0_26] : memref<16x32xbf16, #tpu.memory_space<vmem>>, vector<16x32xbf16>
      tpu.vector_store %arg8[%c0_25, %c0_26], %43 {strides = array<i32>} : memref<16x32xbf16, #tpu.memory_space<vmem>>, vector<16x32xbf16>,
    } else {
    }
    return
  }
  func.func @transform_0(%arg0: i32, %arg1: i32) -> (i32, i32) {
    %c0_i32 = arith.constant 0 : i32
    return %arg0, %arg1 : i32, i32
  }
  func.func @transform_1(%arg0: i32, %arg1: i32) -> (i32, i32) {
    %c0_i32 = arith.constant 0 : i32
    %c0_i32_0 = arith.constant 0 : i32
    return %arg1, %c0_i32 : i32, i32
  }
  func.func @transform_2(%arg0: i32, %arg1: i32) -> (i32, i32) {
    %c0_i32 = arith.constant 0 : i32
    %c0_i32_0 = arith.constant 0 : i32
    %c0_i32_1 = arith.constant 0 : i32
    return %c0_i32, %c0_i32_0 : i32, i32
  }
  func.func @transform_3(%arg0: i32, %arg1: i32) -> (i32, i32) {
    %c0_i32 = arith.constant 0 : i32
    %c0_i32_0 = arith.constant 0 : i32
    return %arg0, %c0_i32 : i32, i32
  }
  func.func @transform_4(%arg0: i32, %arg1: i32) -> (i32, i32) {
    %c0_i32 = arith.constant 0 : i32
    %c0_i32_0 = arith.constant 0 : i32
    %c0_i32_1 = arith.constant 0 : i32
    return %c0_i32, %c0_i32_0 : i32, i32
  }
  func.func @transform_5(%arg0: i32, %arg1: i32) -> (i32, i32) {
    %c0_i32 = arith.constant 0 : i32
    %c0_i32_0 = arith.constant 0 : i32
    %c0_i32_1 = arith.constant 0 : i32
    return %c0_i32, %c0_i32_0 : i32, i32
  }
  func.func @transform_6(%arg0: i32, %arg1: i32) -> (i32, i32) {
    %c0_i32 = arith.constant 0 : i32
    %c0_i32_0 = arith.constant 0 : i32
    return %arg0, %c0_i32 : i32, i32
  }
}

module attributes {stable_mosaic.version = 11 : i64} {
  func.func @_attention_kernel(%arg0: i32, %arg1: i32, %arg2: i32, %arg3: memref<1x1x8x32xbf16, #tpu.memory_space<vmem>>, %arg4: memref<1x1x8x32xbf16, #tpu.memory_space<vmem>>, %arg5: memref<1x1x8x32xbf16, #tpu.memory_space<vmem>>, %arg6: memref<1x1x8xf32, #tpu.memory_space<vmem>>, %arg7: memref<1x8x32xbf16, #tpu.memory_space<vmem>>) attributes {dimension_semantics = [#tpu.dimension_semantics<parallel>, #tpu.dimension_semantics<parallel>, #tpu.dimension_semantics<parallel>], iteration_bounds = array<i64: 2, 1, 1>, scalar_prefetch = 0 : i64, scratch_operands = 0 : i64, tpu.core_type = #tpu.core_type<tc>, window_params = [{transform_indices = @transform_0, window_bounds = array<i64: 1, 1, 8, 32>}, {transform_indices = @transform_1, window_bounds = array<i64: 1, 1, 8, 32>}, {transform_indices = @transform_2, window_bounds = array<i64: 1, 1, 8, 32>}, {transform_indices = @transform_3, window_bounds = array<i64: 1, 1, 8>}, {transform_indices = @transform_4, window_bounds = array<i64: 1, 8, 32>}]} {
    %c0 = arith.constant 0 : index
    %c0_0 = arith.constant 0 : index
    %c0_1 = arith.constant 0 : index
    %c0_2 = arith.constant 0 : index
    %0 = vector.load %arg3[%c0, %c0_0, %c0_1, %c0_2] : memref<1x1x8x32xbf16, #tpu.memory_space<vmem>>, vector<1x1x8x32xbf16>
    %1 = vector.shape_cast %0 : vector<1x1x8x32xbf16> to vector<8x32xbf16>
    %c0_3 = arith.constant 0 : index
    %c0_4 = arith.constant 0 : index
    %c0_5 = arith.constant 0 : index
    %c0_6 = arith.constant 0 : index
    %2 = vector.load %arg4[%c0_3, %c0_4, %c0_5, %c0_6] : memref<1x1x8x32xbf16, #tpu.memory_space<vmem>>, vector<1x1x8x32xbf16>
    %3 = vector.shape_cast %2 : vector<1x1x8x32xbf16> to vector<8x32xbf16>
    %c0_7 = arith.constant 0 : index
    %c0_8 = arith.constant 0 : index
    %c0_9 = arith.constant 0 : index
    %c0_10 = arith.constant 0 : index
    %4 = vector.load %arg5[%c0_7, %c0_8, %c0_9, %c0_10] : memref<1x1x8x32xbf16, #tpu.memory_space<vmem>>, vector<1x1x8x32xbf16>
    %5 = vector.shape_cast %4 : vector<1x1x8x32xbf16> to vector<8x32xbf16>
    %c0_11 = arith.constant 0 : index
    %c0_12 = arith.constant 0 : index
    %c0_13 = arith.constant 0 : index
    %6 = vector.load %arg6[%c0_11, %c0_12, %c0_13] : memref<1x1x8xf32, #tpu.memory_space<vmem>>, vector<1x1x8xf32>
    %7 = vector.shape_cast %6 : vector<1x1x8xf32> to vector<1x8xf32>
    %8 = vector.extract_strided_slice %1 {offsets = [0, 0], sizes = [8, 16], strides = [1, 1]} : vector<8x32xbf16> to vector<8x16xbf16>
    %9 = vector.extract_strided_slice %3 {offsets = [0, 0], sizes = [8, 16], strides = [1, 1]} : vector<8x32xbf16> to vector<8x16xbf16>
    %10 = vector.extract_strided_slice %5 {offsets = [0, 0], sizes = [8, 16], strides = [1, 1]} : vector<8x32xbf16> to vector<8x16xbf16>
    %cst = arith.constant dense<0.000000e+00> : vector<8x8xf32>
    %11 = tpu.matmul %8, %9, %cst {dimension_numbers = #tpu.dot_dimension_numbers<[1], [1], [0], [0], [0, 0, 1, 0], [], []>} : vector<8x16xbf16>, vector<8x16xbf16>, vector<8x8xf32> -> vector<8x8xf32>
    %cst_14 = arith.constant 2.500000e-01 : f32
    %12 = vector.broadcast %cst_14 : f32 to vector<8x8xf32>
    %13 = arith.mulf %11, %12 : vector<8x8xf32>
    %14 = vector.broadcast %7 : vector<1x8xf32> to vector<8x8xf32>
    %15 = arith.addf %13, %14 : vector<8x8xf32>
    %cst_15 = arith.constant dense<0xFF800000> : vector<8xf32>
    %16 = vector.multi_reduction <maximumf>, %15, %cst_15 [1] : vector<8x8xf32> to vector<8xf32>
    %17 = vector.shape_cast %16 : vector<8xf32> to vector<8x1xf32>
    %18 = vector.broadcast %17 : vector<8x1xf32> to vector<8x8xf32>
    %19 = arith.subf %15, %18 : vector<8x8xf32>
    %20 = math.exp %19 : vector<8x8xf32>
    %cst_16 = arith.constant dense<0.000000e+00> : vector<8xf32>
    %21 = vector.multi_reduction <add>, %20, %cst_16 [1] : vector<8x8xf32> to vector<8xf32>
    %22 = vector.shape_cast %21 : vector<8xf32> to vector<8x1xf32>
    %23 = tpu.reciprocal %22 {approx = true} : vector<8x1xf32> -> vector<8x1xf32>
    %24 = vector.broadcast %23 : vector<8x1xf32> to vector<8x8xf32>
    %25 = arith.mulf %20, %24 : vector<8x8xf32>
    %26 = arith.truncf %25 : vector<8x8xf32> to vector<8x8xbf16>
    %cst_17 = arith.constant dense<0.000000e+00> : vector<8x16xf32>
    %27 = tpu.matmul %26, %10, %cst_17 {dimension_numbers = #tpu.dot_dimension_numbers<[1], [0], [0], [1], [0, 0, 1, 1], [], []>} : vector<8x8xbf16>, vector<8x16xbf16>, vector<8x16xf32> -> vector<8x16xf32>
    %28 = vector.extract_strided_slice %1 {offsets = [0, 16], sizes = [8, 16], strides = [1, 1]} : vector<8x32xbf16> to vector<8x16xbf16>
    %29 = vector.extract_strided_slice %3 {offsets = [0, 16], sizes = [8, 16], strides = [1, 1]} : vector<8x32xbf16> to vector<8x16xbf16>
    %30 = vector.extract_strided_slice %5 {offsets = [0, 16], sizes = [8, 16], strides = [1, 1]} : vector<8x32xbf16> to vector<8x16xbf16>
    %cst_18 = arith.constant dense<0.000000e+00> : vector<8x8xf32>
    %31 = tpu.matmul %28, %29, %cst_18 {dimension_numbers = #tpu.dot_dimension_numbers<[1], [1], [0], [0], [0, 0, 1, 0], [], []>} : vector<8x16xbf16>, vector<8x16xbf16>, vector<8x8xf32> -> vector<8x8xf32>
    %cst_19 = arith.constant 2.500000e-01 : f32
    %32 = vector.broadcast %cst_19 : f32 to vector<8x8xf32>
    %33 = arith.mulf %31, %32 : vector<8x8xf32>
    %34 = vector.broadcast %7 : vector<1x8xf32> to vector<8x8xf32>
    %35 = arith.addf %33, %34 : vector<8x8xf32>
    %cst_20 = arith.constant dense<0xFF800000> : vector<8xf32>
    %36 = vector.multi_reduction <maximumf>, %35, %cst_20 [1] : vector<8x8xf32> to vector<8xf32>
    %37 = vector.shape_cast %36 : vector<8xf32> to vector<8x1xf32>
    %38 = vector.broadcast %37 : vector<8x1xf32> to vector<8x8xf32>
    %39 = arith.subf %35, %38 : vector<8x8xf32>
    %40 = math.exp %39 : vector<8x8xf32>
    %cst_21 = arith.constant dense<0.000000e+00> : vector<8xf32>
    %41 = vector.multi_reduction <add>, %40, %cst_21 [1] : vector<8x8xf32> to vector<8xf32>
    %42 = vector.shape_cast %41 : vector<8xf32> to vector<8x1xf32>
    %43 = tpu.reciprocal %42 {approx = true} : vector<8x1xf32> -> vector<8x1xf32>
    %44 = vector.broadcast %43 : vector<8x1xf32> to vector<8x8xf32>
    %45 = arith.mulf %40, %44 : vector<8x8xf32>
    %46 = arith.truncf %45 : vector<8x8xf32> to vector<8x8xbf16>
    %cst_22 = arith.constant dense<0.000000e+00> : vector<8x16xf32>
    %47 = tpu.matmul %46, %30, %cst_22 {dimension_numbers = #tpu.dot_dimension_numbers<[1], [0], [0], [1], [0, 0, 1, 1], [], []>} : vector<8x8xbf16>, vector<8x16xbf16>, vector<8x16xf32> -> vector<8x16xf32>
    %48 = tpu.concatenate %27, %47 in 1 : vector<8x16xf32>, vector<8x16xf32> -> vector<8x32xf32>
    %49 = arith.truncf %48 : vector<8x32xf32> to vector<8x32xbf16>
    %c0_23 = arith.constant 0 : index
    %c0_24 = arith.constant 0 : index
    %c0_25 = arith.constant 0 : index
    %50 = vector.load %arg7[%c0_23, %c0_24, %c0_25] : memref<1x8x32xbf16, #tpu.memory_space<vmem>>, vector<1x8x32xbf16>
    %51 = vector.shape_cast %50 : vector<1x8x32xbf16> to vector<8x32xbf16>
    %52 = vector.shape_cast %49 : vector<8x32xbf16> to vector<1x8x32xbf16>
    tpu.vector_store %arg7[%c0_23, %c0_24, %c0_25], %52 {strides = array<i32>} : memref<1x8x32xbf16, #tpu.memory_space<vmem>>, vector<1x8x32xbf16>,
    return
  }
  func.func @transform_0(%arg0: i32, %arg1: i32, %arg2: i32) -> (i32, i32, i32, i32) {
    %c0_i32 = arith.constant 0 : i32
    %c0_i32_0 = arith.constant 0 : i32
    return %c0_i32, %arg0, %arg1, %arg2 : i32, i32, i32, i32
  }
  func.func @transform_1(%arg0: i32, %arg1: i32, %arg2: i32) -> (i32, i32, i32, i32) {
    %c1_i32 = arith.constant 1 : i32
    %c0_i32 = arith.constant 0 : i32
    %c0_i32_0 = arith.constant 0 : i32
    return %c1_i32, %arg0, %c0_i32, %arg2 : i32, i32, i32, i32
  }
  func.func @transform_2(%arg0: i32, %arg1: i32, %arg2: i32) -> (i32, i32, i32, i32) {
    %c2_i32 = arith.constant 2 : i32
    %c0_i32 = arith.constant 0 : i32
    %c0_i32_0 = arith.constant 0 : i32
    return %c2_i32, %arg0, %c0_i32, %arg2 : i32, i32, i32, i32
  }
  func.func @transform_3(%arg0: i32, %arg1: i32, %arg2: i32) -> (i32, i32, i32) {
    %c0_i32 = arith.constant 0 : i32
    %c0_i32_0 = arith.constant 0 : i32
    %c0_i32_1 = arith.constant 0 : i32
    return %arg0, %c0_i32, %c0_i32_0 : i32, i32, i32
  }
  func.func @transform_4(%arg0: i32, %arg1: i32, %arg2: i32) -> (i32, i32, i32) {
    %c0_i32 = arith.constant 0 : i32
    return %arg0, %arg1, %arg2 : i32, i32, i32
  }
}

module attributes {stable_mosaic.version = 11 : i64} {
  func.func @_ffn_kernel(%arg0: i32, %arg1: i32, %arg2: memref<16x32xbf16, #tpu.memory_space<vmem>>, %arg3: memref<32x64xbf16, #tpu.memory_space<vmem>>, %arg4: memref<1x64xf32, #tpu.memory_space<vmem>>, %arg5: memref<64x32xbf16, #tpu.memory_space<vmem>>, %arg6: memref<1x32xf32, #tpu.memory_space<vmem>>, %arg7: memref<16x32xbf16, #tpu.memory_space<vmem>>, %arg8: memref<1x32xf32, #tpu.memory_space<vmem>>, %arg9: memref<1x32xf32, #tpu.memory_space<vmem>>, %arg10: memref<16x32xbf16, #tpu.memory_space<vmem>>, %arg11: memref<16x32xf32, #tpu.memory_space<vmem>>) attributes {dimension_semantics = [#tpu.dimension_semantics<parallel>, #tpu.dimension_semantics<arbitrary>], iteration_bounds = array<i64: 1, 1>, scalar_prefetch = 0 : i64, scratch_operands = 1 : i64, tpu.core_type = #tpu.core_type<tc>, window_params = [{transform_indices = @transform_0, window_bounds = array<i64: 16, 32>}, {transform_indices = @transform_1, window_bounds = array<i64: 32, 64>}, {transform_indices = @transform_2, window_bounds = array<i64: 1, 64>}, {transform_indices = @transform_3, window_bounds = array<i64: 64, 32>}, {pipeline_mode = #tpu.pipeline_mode<synchronous>, transform_indices = @transform_4, window_bounds = array<i64: 1, 32>}, {transform_indices = @transform_5, window_bounds = array<i64: 16, 32>}, {pipeline_mode = #tpu.pipeline_mode<synchronous>, transform_indices = @transform_6, window_bounds = array<i64: 1, 32>}, {pipeline_mode = #tpu.pipeline_mode<synchronous>, transform_indices = @transform_7, window_bounds = array<i64: 1, 32>}, {transform_indices = @transform_8, window_bounds = array<i64: 16, 32>}]} {
    %c0_i32 = arith.constant 0 : i32
    %0 = arith.cmpi eq, %arg1, %c0_i32 : i32
    %1 = arith.extui %0 : i1 to i32
    %c0_i32_0 = arith.constant 0 : i32
    %2 = arith.cmpi ne, %1, %c0_i32_0 : i32
    scf.if %2 {
      %cst_19 = arith.constant 0.000000e+00 : f32
      %31 = vector.broadcast %cst_19 : f32 to vector<16x32xf32>
      %c0_20 = arith.constant 0 : index
      %c0_21 = arith.constant 0 : index
      %32 = vector.load %arg11[%c0_20, %c0_21] : memref<16x32xf32, #tpu.memory_space<vmem>>, vector<16x32xf32>
      tpu.vector_store %arg11[%c0_20, %c0_21], %31 {strides = array<i32>} : memref<16x32xf32, #tpu.memory_space<vmem>>, vector<16x32xf32>,
    } else {
    }
    %c0 = arith.constant 0 : index
    %c0_1 = arith.constant 0 : index
    %3 = vector.load %arg2[%c0, %c0_1] : memref<16x32xbf16, #tpu.memory_space<vmem>>, vector<16x32xbf16>
    %c0_2 = arith.constant 0 : index
    %c0_3 = arith.constant 0 : index
    %4 = vector.load %arg3[%c0_2, %c0_3] : memref<32x64xbf16, #tpu.memory_space<vmem>>, vector<32x64xbf16>
    %cst = arith.constant dense<0.000000e+00> : vector<16x64xf32>
    %5 = tpu.matmul %3, %4, %cst {dimension_numbers = #tpu.dot_dimension_numbers<[1], [0], [0], [1], [0, 0, 1, 1], [], []>} : vector<16x32xbf16>, vector<32x64xbf16>, vector<16x64xf32> -> vector<16x64xf32>
    %c0_4 = arith.constant 0 : index
    %c0_5 = arith.constant 0 : index
    %6 = vector.load %arg4[%c0_4, %c0_5] : memref<1x64xf32, #tpu.memory_space<vmem>>, vector<1x64xf32>
    %7 = vector.broadcast %6 : vector<1x64xf32> to vector<16x64xf32>
    %8 = arith.addf %5, %7 : vector<16x64xf32>
    %9 = arith.mulf %8, %8 : vector<16x64xf32>
    %10 = arith.mulf %8, %9 : vector<16x64xf32>
    %cst_6 = arith.constant 4.471500e-02 : f32
    %11 = vector.broadcast %cst_6 : f32 to vector<16x64xf32>
    %12 = arith.mulf %11, %10 : vector<16x64xf32>
    %13 = arith.addf %8, %12 : vector<16x64xf32>
    %cst_7 = arith.constant 0.797884583 : f32
    %14 = vector.broadcast %cst_7 : f32 to vector<16x64xf32>
    %15 = arith.mulf %14, %13 : vector<16x64xf32>
    %16 = math.tanh %15 : vector<16x64xf32>
    %cst_8 = arith.constant 1.000000e+00 : f32
    %17 = vector.broadcast %cst_8 : f32 to vector<16x64xf32>
    %18 = arith.addf %17, %16 : vector<16x64xf32>
    %cst_9 = arith.constant 5.000000e-01 : f32
    %19 = vector.broadcast %cst_9 : f32 to vector<16x64xf32>
    %20 = arith.mulf %19, %18 : vector<16x64xf32>
    %21 = arith.mulf %8, %20 : vector<16x64xf32>
    %c0_10 = arith.constant 0 : index
    %c0_11 = arith.constant 0 : index
    %22 = vector.load %arg11[%c0_10, %c0_11] : memref<16x32xf32, #tpu.memory_space<vmem>>, vector<16x32xf32>
    %23 = arith.truncf %21 : vector<16x64xf32> to vector<16x64xbf16>
    %c0_12 = arith.constant 0 : index
    %c0_13 = arith.constant 0 : index
    %24 = vector.load %arg5[%c0_12, %c0_13] : memref<64x32xbf16, #tpu.memory_space<vmem>>, vector<64x32xbf16>
    %cst_14 = arith.constant dense<0.000000e+00> : vector<16x32xf32>
    %25 = tpu.matmul %23, %24, %cst_14 {dimension_numbers = #tpu.dot_dimension_numbers<[1], [0], [0], [1], [0, 0, 1, 1], [], []>} : vector<16x64xbf16>, vector<64x32xbf16>, vector<16x32xf32> -> vector<16x32xf32>
    %26 = arith.addf %22, %25 : vector<16x32xf32>
    %c0_15 = arith.constant 0 : index
    %c0_16 = arith.constant 0 : index
    %27 = vector.load %arg11[%c0_15, %c0_16] : memref<16x32xf32, #tpu.memory_space<vmem>>, vector<16x32xf32>
    tpu.vector_store %arg11[%c0_15, %c0_16], %26 {strides = array<i32>} : memref<16x32xf32, #tpu.memory_space<vmem>>, vector<16x32xf32>,
    %c0_i32_17 = arith.constant 0 : i32
    %28 = arith.cmpi eq, %arg1, %c0_i32_17 : i32
    %29 = arith.extui %28 : i1 to i32
    %c0_i32_18 = arith.constant 0 : i32
    %30 = arith.cmpi ne, %29, %c0_i32_18 : i32
    scf.if %30 {
      %c0_19 = arith.constant 0 : index
      %c0_20 = arith.constant 0 : index
      %31 = vector.load %arg11[%c0_19, %c0_20] : memref<16x32xf32, #tpu.memory_space<vmem>>, vector<16x32xf32>
      %c0_21 = arith.constant 0 : index
      %c0_22 = arith.constant 0 : index
      %32 = vector.load %arg6[%c0_21, %c0_22] : memref<1x32xf32, #tpu.memory_space<vmem>>, vector<1x32xf32>
      %33 = vector.broadcast %32 : vector<1x32xf32> to vector<16x32xf32>
      %34 = arith.addf %31, %33 : vector<16x32xf32>
      %c0_23 = arith.constant 0 : index
      %c0_24 = arith.constant 0 : index
      %35 = vector.load %arg7[%c0_23, %c0_24] : memref<16x32xbf16, #tpu.memory_space<vmem>>, vector<16x32xbf16>
      %36 = arith.extf %35 : vector<16x32xbf16> to vector<16x32xf32>
      %37 = arith.addf %34, %36 : vector<16x32xf32>
      %cst_25 = arith.constant dense<0.000000e+00> : vector<16xf32>
      %38 = vector.multi_reduction <add>, %37, %cst_25 [1] : vector<16x32xf32> to vector<16xf32>
      %39 = vector.shape_cast %38 : vector<16xf32> to vector<16x1xf32>
      %cst_26 = arith.constant 3.200000e+01 : f32
      %40 = vector.broadcast %cst_26 : f32 to vector<16x1xf32>
      %41 = arith.divf %39, %40 : vector<16x1xf32>
      %42 = vector.broadcast %41 : vector<16x1xf32> to vector<16x32xf32>
      %43 = arith.subf %37, %42 : vector<16x32xf32>
      %44 = arith.mulf %43, %43 : vector<16x32xf32>
      %cst_27 = arith.constant dense<0.000000e+00> : vector<16xf32>
      %45 = vector.multi_reduction <add>, %44, %cst_27 [1] : vector<16x32xf32> to vector<16xf32>
      %46 = vector.shape_cast %45 : vector<16xf32> to vector<16x1xf32>
      %cst_28 = arith.constant 3.200000e+01 : f32
      %47 = vector.broadcast %cst_28 : f32 to vector<16x1xf32>
      %48 = arith.divf %46, %47 : vector<16x1xf32>
      %49 = vector.broadcast %41 : vector<16x1xf32> to vector<16x32xf32>
      %50 = arith.subf %37, %49 : vector<16x32xf32>
      %cst_29 = arith.constant 9.99999996E-13 : f32
      %51 = vector.broadcast %cst_29 : f32 to vector<16x1xf32>
      %52 = arith.addf %48, %51 : vector<16x1xf32>
      %53 = math.rsqrt %52 : vector<16x1xf32>
      %54 = vector.broadcast %53 : vector<16x1xf32> to vector<16x32xf32>
      %55 = arith.mulf %50, %54 : vector<16x32xf32>
      %c0_30 = arith.constant 0 : index
      %c0_31 = arith.constant 0 : index
      %56 = vector.load %arg8[%c0_30, %c0_31] : memref<1x32xf32, #tpu.memory_space<vmem>>, vector<1x32xf32>
      %57 = vector.broadcast %56 : vector<1x32xf32> to vector<16x32xf32>
      %58 = arith.mulf %55, %57 : vector<16x32xf32>
      %c0_32 = arith.constant 0 : index
      %c0_33 = arith.constant 0 : index
      %59 = vector.load %arg9[%c0_32, %c0_33] : memref<1x32xf32, #tpu.memory_space<vmem>>, vector<1x32xf32>
      %60 = vector.broadcast %59 : vector<1x32xf32> to vector<16x32xf32>
      %61 = arith.addf %58, %60 : vector<16x32xf32>
      %62 = arith.truncf %61 : vector<16x32xf32> to vector<16x32xbf16>
      %c0_34 = arith.constant 0 : index
      %c0_35 = arith.constant 0 : index
      %63 = vector.load %arg10[%c0_34, %c0_35] : memref<16x32xbf16, #tpu.memory_space<vmem>>, vector<16x32xbf16>
      tpu.vector_store %arg10[%c0_34, %c0_35], %62 {strides = array<i32>} : memref<16x32xbf16, #tpu.memory_space<vmem>>, vector<16x32xbf16>,
    } else {
    }
    return
  }
  func.func @transform_0(%arg0: i32, %arg1: i32) -> (i32, i32) {
    %c0_i32 = arith.constant 0 : i32
    %c0_i32_0 = arith.constant 0 : i32
    return %arg0, %c0_i32 : i32, i32
  }
  func.func @transform_1(%arg0: i32, %arg1: i32) -> (i32, i32) {
    %c0_i32 = arith.constant 0 : i32
    %c0_i32_0 = arith.constant 0 : i32
    return %c0_i32, %arg1 : i32, i32
  }
  func.func @transform_2(%arg0: i32, %arg1: i32) -> (i32, i32) {
    %c0_i32 = arith.constant 0 : i32
    %c0_i32_0 = arith.constant 0 : i32
    return %c0_i32, %arg1 : i32, i32
  }
  func.func @transform_3(%arg0: i32, %arg1: i32) -> (i32, i32) {
    %c0_i32 = arith.constant 0 : i32
    %c0_i32_0 = arith.constant 0 : i32
    return %arg1, %c0_i32 : i32, i32
  }
  func.func @transform_4(%arg0: i32, %arg1: i32) -> (i32, i32) {
    %c0_i32 = arith.constant 0 : i32
    %c0_i32_0 = arith.constant 0 : i32
    %c0_i32_1 = arith.constant 0 : i32
    return %c0_i32, %c0_i32_0 : i32, i32
  }
  func.func @transform_5(%arg0: i32, %arg1: i32) -> (i32, i32) {
    %c0_i32 = arith.constant 0 : i32
    %c0_i32_0 = arith.constant 0 : i32
    return %arg0, %c0_i32 : i32, i32
  }
  func.func @transform_6(%arg0: i32, %arg1: i32) -> (i32, i32) {
    %c0_i32 = arith.constant 0 : i32
    %c0_i32_0 = arith.constant 0 : i32
    %c0_i32_1 = arith.constant 0 : i32
    return %c0_i32, %c0_i32_0 : i32, i32
  }
  func.func @transform_7(%arg0: i32, %arg1: i32) -> (i32, i32) {
    %c0_i32 = arith.constant 0 : i32
    %c0_i32_0 = arith.constant 0 : i32
    %c0_i32_1 = arith.constant 0 : i32
    return %c0_i32, %c0_i32_0 : i32, i32
  }
  func.func @transform_8(%arg0: i32, %arg1: i32) -> (i32, i32) {
    %c0_i32 = arith.constant 0 : i32
    %c0_i32_0 = arith.constant 0 : i32
    return %arg0, %c0_i32 : i32, i32
  }
}

module attributes {stable_mosaic.version = 11 : i64} {
  func.func @_pooler_cls_kernel(%arg0: i32, %arg1: memref<2x32xf32, #tpu.memory_space<vmem>>, %arg2: memref<32x32xf32, #tpu.memory_space<vmem>>, %arg3: memref<1x32xf32, #tpu.memory_space<vmem>>, %arg4: memref<32x3xf32, #tpu.memory_space<vmem>>, %arg5: memref<1x3xf32, #tpu.memory_space<vmem>>, %arg6: memref<2x3xf32, #tpu.memory_space<vmem>>) attributes {dimension_semantics = [#tpu.dimension_semantics<arbitrary>], iteration_bounds = array<i64: 1>, scalar_prefetch = 0 : i64, scratch_operands = 0 : i64, tpu.core_type = #tpu.core_type<tc>, window_params = [{pipeline_mode = #tpu.pipeline_mode<synchronous>, transform_indices = @transform_0, window_bounds = array<i64: 2, 32>}, {pipeline_mode = #tpu.pipeline_mode<synchronous>, transform_indices = @transform_1, window_bounds = array<i64: 32, 32>}, {pipeline_mode = #tpu.pipeline_mode<synchronous>, transform_indices = @transform_2, window_bounds = array<i64: 1, 32>}, {pipeline_mode = #tpu.pipeline_mode<synchronous>, transform_indices = @transform_3, window_bounds = array<i64: 32, 3>}, {pipeline_mode = #tpu.pipeline_mode<synchronous>, transform_indices = @transform_4, window_bounds = array<i64: 1, 3>}, {pipeline_mode = #tpu.pipeline_mode<synchronous>, transform_indices = @transform_5, window_bounds = array<i64: 2, 3>}]} {
    %c0 = arith.constant 0 : index
    %c0_0 = arith.constant 0 : index
    %0 = vector.load %arg1[%c0, %c0_0] : memref<2x32xf32, #tpu.memory_space<vmem>>, vector<2x32xf32>
    %c0_1 = arith.constant 0 : index
    %c0_2 = arith.constant 0 : index
    %1 = vector.load %arg2[%c0_1, %c0_2] : memref<32x32xf32, #tpu.memory_space<vmem>>, vector<32x32xf32>
    %cst = arith.constant dense<0.000000e+00> : vector<2x32xf32>
    %2 = tpu.matmul %0, %1, %cst {dimension_numbers = #tpu.dot_dimension_numbers<[1], [0], [0], [1], [0, 0, 1, 1], [], []>} : vector<2x32xf32>, vector<32x32xf32>, vector<2x32xf32> -> vector<2x32xf32>
    %c0_3 = arith.constant 0 : index
    %c0_4 = arith.constant 0 : index
    %3 = vector.load %arg3[%c0_3, %c0_4] : memref<1x32xf32, #tpu.memory_space<vmem>>, vector<1x32xf32>
    %4 = vector.broadcast %3 : vector<1x32xf32> to vector<2x32xf32>
    %5 = arith.addf %2, %4 : vector<2x32xf32>
    %6 = math.tanh %5 : vector<2x32xf32>
    %c0_5 = arith.constant 0 : index
    %c0_6 = arith.constant 0 : index
    %7 = vector.load %arg4[%c0_5, %c0_6] : memref<32x3xf32, #tpu.memory_space<vmem>>, vector<32x3xf32>
    %cst_7 = arith.constant dense<0.000000e+00> : vector<2x3xf32>
    %8 = tpu.matmul %6, %7, %cst_7 {dimension_numbers = #tpu.dot_dimension_numbers<[1], [0], [0], [1], [0, 0, 1, 1], [], []>} : vector<2x32xf32>, vector<32x3xf32>, vector<2x3xf32> -> vector<2x3xf32>
    %c0_8 = arith.constant 0 : index
    %c0_9 = arith.constant 0 : index
    %9 = vector.load %arg5[%c0_8, %c0_9] : memref<1x3xf32, #tpu.memory_space<vmem>>, vector<1x3xf32>
    %10 = vector.broadcast %9 : vector<1x3xf32> to vector<2x3xf32>
    %11 = arith.addf %8, %10 : vector<2x3xf32>
    %c0_10 = arith.constant 0 : index
    %c0_11 = arith.constant 0 : index
    %12 = vector.load %arg6[%c0_10, %c0_11] : memref<2x3xf32, #tpu.memory_space<vmem>>, vector<2x3xf32>
    tpu.vector_store %arg6[%c0_10, %c0_11], %11 {strides = array<i32>} : memref<2x3xf32, #tpu.memory_space<vmem>>, vector<2x3xf32>,
    return
  }
  func.func @transform_0(%arg0: i32) -> (i32, i32) {
    %c0_i32 = arith.constant 0 : i32
    %c0_i32_0 = arith.constant 0 : i32
    %c0_i32_1 = arith.constant 0 : i32
    return %c0_i32, %c0_i32_0 : i32, i32
  }
  func.func @transform_1(%arg0: i32) -> (i32, i32) {
    %c0_i32 = arith.constant 0 : i32
    %c0_i32_0 = arith.constant 0 : i32
    %c0_i32_1 = arith.constant 0 : i32
    return %c0_i32, %c0_i32_0 : i32, i32
  }
  func.func @transform_2(%arg0: i32) -> (i32, i32) {
    %c0_i32 = arith.constant 0 : i32
    %c0_i32_0 = arith.constant 0 : i32
    %c0_i32_1 = arith.constant 0 : i32
    return %c0_i32, %c0_i32_0 : i32, i32
  }
  func.func @transform_3(%arg0: i32) -> (i32, i32) {
    %c0_i32 = arith.constant 0 : i32
    %c0_i32_0 = arith.constant 0 : i32
    %c0_i32_1 = arith.constant 0 : i32
    return %c0_i32, %c0_i32_0 : i32, i32
  }
  func.func @transform_4(%arg0: i32) -> (i32, i32) {
    %c0_i32 = arith.constant 0 : i32
    %c0_i32_0 = arith.constant 0 : i32
    %c0_i32_1 = arith.constant 0 : i32
    return %c0_i32, %c0_i32_0 : i32, i32
  }
  func.func @transform_5(%arg0: i32) -> (i32, i32) {
    %c0_i32 = arith.constant 0 : i32
    %c0_i32_0 = arith.constant 0 : i32
    %c0_i32_1 = arith.constant 0 : i32
    return %c0_i32, %c0_i32_0 : i32, i32
  }
}

</mosaic_0001>

<bundles_post_ra>
// kernel: bert_classifier_forward.10
= control target key start
LH: loop header
LB: loop body
LE: loop exit
PB: predicated region body
PF: predicated region fallthrough
CT: control target
= control target key end

     0   :  { %vm30_vm0 = vcmask 261120   ;;  %vm84_vm1 = vcmask 257024   ;;  %s165_s0 = inlined_call_operand.vmem [shape: f32[16,32], index: 0, kind: input, shape index: {}]   ;;  %s166_s1 = inlined_call_operand.vmem [shape: f32[16,32], index: 1, kind: input, shape index: {}]   ;;  %s167_s2 = inlined_call_operand.vmem [shape: f32[16,32], index: 2, kind: input, shape index: {}]   ;;  %s168_s3 = inlined_call_operand.vmem [shape: f32[1,32], index: 3, kind: input, shape index: {}]   ;;  %s169_s4 = inlined_call_operand.vmem [shape: f32[1,32], index: 4, kind: input, shape index: {}]   ;;  %s170_s5 = inlined_call_operand.vmem [shape: bf16[16,32], index: 5, kind: output, shape index: {}]  }
   0x1   :  { %v20_v0 = vld [vmem:[%s165_s0] sm:$0xff]  ;;  %v21_v4 = vld [vmem:[%s165_s0 + $0x8] sm:$0xff] }
   0x2   :  { %v22_v1 = vld [vmem:[%s166_s1] sm:$0xff]  ;;  %v23_v5 = vld [vmem:[%s166_s1 + $0x8] sm:$0xff] }
   0x3   :  { %v26_v2 = vld [vmem:[%s167_s2] sm:$0xff]  ;;  %v24_v3 = vadd.f32 %v22_v1, %v20_v0  ;;  %v27_v6 = vld [vmem:[%s167_s2 + $0x8] sm:$0xff]  ;;  %v25_v7 = vadd.f32 %v23_v5, %v21_v4 }
   0x4   :  { %v91_v29 = vld [vmem:[%s168_s3] ss:$0 sm:$0xff] }
   0x5   :  { %v28_v8 = vadd.f32 %v26_v2, %v24_v3  ;;  %v29_v9 = vadd.f32 %v27_v6, %v25_v7  ;;  %v92_v31 = vld [vmem:[%s169_s4] ss:$0 sm:$0xff] }
   0x7   :  { %v31_v10 = vsel %vm30_vm0, %v28_v8, 0.0  ;;  %v34_v11 = vsel %vm30_vm0, %v29_v9, 0.0 }
   0x8   :  { %32 = vadd.xlane.f32.xlu0 %v31_v10 }
   0xc   :  { %35 = vadd.xlane.f32.xlu0 %v34_v11 }
  0x91   :  { %v33_v12 = vpop.xlane.xlu0 %32 }
  0x92   :  { %v38_v13 = vmul.f32 0.03125, %v33_v12 }
  0x94   :  { %v40_v14 = vsub.f32 %v28_v8, %v38_v13 }
  0x95   :  { %v36_v15 = vpop.xlane.xlu0 %35 }
  0x96   :  { %v39_v16 = vmul.f32 0.03125, %v36_v15  ;;  %v42_v17 = vmul.f32 %v40_v14, %v40_v14 }
  0x98   :  { %v41_v18 = vsub.f32 %v29_v9, %v39_v16  ;;  %v44_v19 = vsel %vm30_vm0, %v42_v17, 0.0 }
  0x99   :  { %45 = vadd.xlane.f32.xlu1 %v44_v19 }
  0x9a   :  { %v43_v20 = vmul.f32 %v41_v18, %v41_v18 }
  0x9c   :  { %v47_v21 = vsel %vm30_vm0, %v43_v20, 0.0 }
  0x9d   :  { %48 = vadd.xlane.f32.xlu1 %v47_v21 }
 0x122   :  { %v46_v22 = vpop.xlane.xlu1 %45 }
 0x123   :  { %v50_v23 = vmul.f32 0.03125, %v46_v22 }
 0x125   :  { %v52_v24 = vadd.f32 1e-12, %v50_v23 }
 0x126   :  { %v49_v25 = vpop.xlane.xlu1 %48 }
 0x127   :  { %97 = vrsqrt.f32 %v52_v24  ;;  %v51_v26 = vmul.f32 0.03125, %v49_v25 }
 0x129   :  { %v53_v27 = vadd.f32 1e-12, %v51_v26 }
 0x12b   :  { %99 = vrsqrt.f32 %v53_v27 }
 0x134   :  { %v98_v28 = vpop.eup %97 }
 0x135   :  { %v56_v30 = vmul.f32 %v98_v28, %v40_v14 }
 0x137   :  { %v65_v32 = vmul.f32 %v91_v29, %v56_v30 }
 0x138   :  { %v100_v33 = vpop.eup %99 }
 0x139   :  { %v74_v34 = vadd.f32 %v92_v31, %v65_v32  ;;  %v57_v35 = vmul.f32 %v100_v33, %v41_v18 }
 0x13b   :  { %v95_v36 = vpack.c.bf16 %v74_v34, %v74_v34  ;;  %v66_v37 = vmul.f32 %v91_v29, %v57_v35 }
 0x13d   :  { %85 = vst.msk [vmem:[%s170_s5] sm:$0xf] %vm84_vm1, %v95_v36  ;;  %v75_v38 = vadd.f32 %v92_v31, %v66_v37 }
 0x13f   :  { %v96_v39 = vpack.c.bf16 %v75_v38, %v75_v38 }
 0x141   :  { %86 = vst.msk [vmem:[%s170_s5 + $0x4] sm:$0xf] %vm84_vm1, %v96_v39 }

// kernel: bert_classifier_forward.11
= control target key start
LH: loop header
LB: loop body
LE: loop exit
PB: predicated region body
PF: predicated region fallthrough
CT: control target
= control target key end

     0   :  { %s653_s12 = smov 0   ;;  %s655_s13 = smov 0   ;;  %s697_s0 = inlined_call_operand.vmem [shape: bf16[16,32], index: 0, kind: input, shape index: {}]   ;;  %s698_s1 = inlined_call_operand.vmem [shape: bf16[3,32,32], index: 1, kind: input, shape index: {}]   ;;  %s699_s2 = inlined_call_operand.vmem [shape: f32[3,1,32], index: 2, kind: input, shape index: {}]   ;;  %s700_s3 = inlined_call_operand.vmem [shape: bf16[3,16,32], index: 3, kind: output, shape index: {}]  }
   0x1   :  { %s657_s14 = smov 0  }
   0x2 LB: > { %s39_s15 = sadd.s32 1, %s625_s13  ;;  %p549_p0 = scmp.ge.s32.totalorder %s629_s14, 1  ;;  %s629_s14 = sphi %s657_s14, %s13_s14   ;;  %s625_s13 = sphi %s655_s13, %s702_s13   ;;  %s621_s12 = sphi %s653_s12, %s701_s12  }
   0x3   : > { %p41_p1 = scmp.ge.s32.totalorder %s39_s15, 3  ;;  %p208_p2 = scmp.lt.s32.totalorder %s629_s14, 4 }
   0x5   : > { %s704_s15 = smov (%p41_p1, %s39_s15), 0  ;;  %p209_p3 = pnand %p549_p0, %p208_p2 }
   0x6   : > { %p270_p4 = scmp.lt.s32.totalorder (!%p209_p3), %s621_s12, 2 }
   0x7   : > { %212 = sbr.rel (%p209_p3) target bundleno = 235 (0xeb), region = 32 }
   0xc   : > { %vm306_vm0 = vcmask 261120   ;;  %v631_v0 = vmov 0.0   ;;  %vm632_vm1 = vmmov 0   ;;  %s706_s12 = smov (!%p270_p4, %s621_s12), 2  ;;  %v606_v3 = vld [vmem:[%s697_s0] sm:$0xff]   ;;  %vm405_vm2 = vcmask 257024  }
   0xd   : > { %570 = vmatprep.subr.bf16.mxu0 %v631_v0  ;;  %574 = vmatprep.mubr.msk.bf16.mxu0 %vm632_vm1, %v631_v0  ;;  %307 = vst.msk [vmem:[#allocation2] sm:$0xff] %vm306_vm0, %v631_v0  ;;  %308 = vst.msk [vmem:[#allocation2 + $0x8] sm:$0xff] %vm306_vm0, %v631_v0  ;;  %s563_s16 = sshll.u32 %s706_s12, 4  ;;  %s287_s24 = scalar_lea.vmem %s699_s2, %s706_s12 }
   0xe   : > { %s280_s19 = scalar_lea.vmem %s698_s1, %s563_s16  ;;  %v558_v12 = vld [vmem:[%s287_s24] ss:$0 sm:$0xff]  ;;  %s564_s25 = sshll.u32 %s706_s12, 3 }
   0xf   : > { %v604_v1 = vld [vmem:[%s280_s19 + $0x8] sm:$0xff]   ;;  %v605_v2 = vld [vmem:[%s280_s19] sm:$0xff]   ;;  %s299_s28 = scalar_lea.vmem %s700_s3, %s564_s25 }
  0x10   : > { %571 = vmatpush3.bf16.msra.mxu0 %v604_v1 }
  0x11   : > { %572 = vmatprep.subr.bf16.mxu0 %v631_v0 }
  0x14   : > { %573 = vmatpush3.bf16.msra.mxu0 %v605_v2  ;;  %v309_v4 = vld [vmem:[#allocation2] sm:$0xff]  ;;  %v310_v8 = vld [vmem:[#allocation2 + $0x8] sm:$0xff] }
  0x17   : > { %575 = vmatmul.mubr.msk.bf16.vlgmr.msra.gmra.mxu0 %vm306_vm0, %v606_v3 }
  0xd7   : > { %v372_v5 = vpop.f32.mrf.mxu0 }
  0xd8   : > { %v379_v6 = vadd.f32 %v372_v5, %v309_v4 }
  0xd9   : > { %v576_v7 = vpop.f32.mrf.mxu0 }
  0xda   : > { %381 = vst.msk [vmem:[#allocation2] sm:$0xff] %vm306_vm0, %v379_v6 }
  0xdb   : > { %v375_v9 = vpop.f32.mrf.mxu0 }
  0xdc   : > { %v380_v10 = vadd.f32 %v375_v9, %v310_v8 }
  0xdd   : > { %v577_v11 = vpop.f32.mrf.mxu0 }
  0xde   : > { %382 = vst.msk [vmem:[#allocation2 + $0x8] sm:$0xff] %vm306_vm0, %v380_v10 }
  0xe1   : > { %v386_v13 = vld [vmem:[#allocation2] sm:$0xff] }
  0xe2   : > { %v395_v14 = vadd.f32 %v558_v12, %v386_v13 }
  0xe4   : > { %v565_v15 = vpack.c.bf16 %v395_v14, %v395_v14 }
  0xe5   : > { %v387_v16 = vld [vmem:[#allocation2 + $0x8] sm:$0xff] }
  0xe6   : > { %406 = vst.msk [vmem:[%s299_s28] sm:$0xf] %vm405_vm2, %v565_v15  ;;  %v396_v17 = vadd.f32 %v558_v12, %v387_v16 }
  0xe8   : > { %v566_v18 = vpack.c.bf16 %v396_v17, %v396_v17 }
  0xea   : > { %407 = vst.msk [vmem:[%s299_s28 + $0x4] sm:$0xf] %vm405_vm2, %v566_v18 }
  0xeb PF: > { %s13_s14 = sadd.s32 1, %s629_s14   ;;  %s701_s12 = smov %s625_s13 }
  0xec   : > { %p10_p5 = scmp.ge.s32.totalorder %s13_s14, 5   ;;  %s702_s13 = smov %s704_s15 }
  0xee   :  { %12 = sbr.rel (!%p10_p5) target bundleno = 2 (0x2), region = 76 }

// kernel: bert_classifier_forward.13
= control target key start
LH: loop header
LB: loop body
LE: loop exit
PB: predicated region body
PF: predicated region fallthrough
CT: control target
= control target key end

     0   :  { %vm28_vm0 = vcmask 261120   ;;  %v220_v0 = vmov 0.0   ;;  %vm221_vm1 = vmmov 0   ;;  %vm178_vm2 = vcmask 257024   ;;  %s293_s1 = inlined_call_operand.vmem [shape: bf16[32,32], index: 1, kind: input, shape index: {}]   ;;  %s294_s0 = inlined_call_operand.vmem [shape: bf16[16,32], index: 0, kind: input, shape index: {}]   ;;  %s295_s3 = inlined_call_operand.vmem [shape: bf16[16,32], index: 3, kind: input, shape index: {}]   ;;  %s296_s2 = inlined_call_operand.vmem [shape: f32[1,32], index: 2, kind: input, shape index: {}]   ;;  %s297_s4 = inlined_call_operand.vmem [shape: f32[1,32], index: 4, kind: input, shape index: {}]   ;;  %s298_s5 = inlined_call_operand.vmem [shape: f32[1,32], index: 5, kind: input, shape index: {}]   ;;  %s299_s6 = inlined_call_operand.vmem [shape: bf16[16,32], index: 6, kind: output, shape index: {}]  }
   0x1   :  { %203 = vmatprep.subr.bf16.mxu0 %v220_v0  ;;  %v213_v1 = vld [vmem:[%s293_s1 + $0x8] sm:$0xff]   ;;  %207 = vmatprep.mubr.msk.bf16.mxu0 %vm221_vm1, %v220_v0  ;;  %29 = vst.msk [vmem:[#allocation2] sm:$0xff] %vm28_vm0, %v220_v0  ;;  %30 = vst.msk [vmem:[#allocation2 + $0x8] sm:$0xff] %vm28_vm0, %v220_v0  ;;  %v214_v2 = vld [vmem:[%s293_s1] sm:$0xff]  }
   0x2   :  { %204 = vmatpush3.bf16.msra.mxu0 %v213_v1  ;;  %v215_v3 = vld [vmem:[%s294_s0] sm:$0xff]  }
   0x3   :  { %205 = vmatprep.subr.bf16.mxu0 %v220_v0  ;;  %v197_v12 = vld [vmem:[%s295_s3] sm:$0xff]  }
   0x4   :  { %v189_v13 = vld [vmem:[%s296_s2] ss:$0 sm:$0xff]  ;;  %v198_v14 = vunpack.c.l.bf16 %v197_v12  ;;  %v199_v18 = vunpack.c.h.bf16 %v197_v12 }
   0x5   :  { %v190_v41 = vld [vmem:[%s297_s4] ss:$0 sm:$0xff] }
   0x6   :  { %206 = vmatpush3.bf16.msra.mxu0 %v214_v2  ;;  %v191_v43 = vld [vmem:[%s298_s5] ss:$0 sm:$0xff] }
   0x8   :  { %v31_v4 = vld [vmem:[#allocation2] sm:$0xff]  ;;  %v32_v8 = vld [vmem:[#allocation2 + $0x8] sm:$0xff] }
   0x9   :  { %208 = vmatmul.mubr.msk.bf16.vlgmr.msra.gmra.mxu0 %vm28_vm0, %v215_v3 }
  0xc9   :  { %v94_v5 = vpop.f32.mrf.mxu0 }
  0xca   :  { %v101_v6 = vadd.f32 %v94_v5, %v31_v4 }
  0xcb   :  { %v209_v7 = vpop.f32.mrf.mxu0 }
  0xcc   :  { %103 = vst.msk [vmem:[#allocation2] sm:$0xff] %vm28_vm0, %v101_v6 }
  0xcd   :  { %v97_v9 = vpop.f32.mrf.mxu0 }
  0xce   :  { %v102_v10 = vadd.f32 %v97_v9, %v32_v8 }
  0xcf   :  { %v210_v11 = vpop.f32.mrf.mxu0 }
  0xd0   :  { %104 = vst.msk [vmem:[#allocation2 + $0x8] sm:$0xff] %vm28_vm0, %v102_v10 }
  0xd3   :  { %v108_v15 = vld [vmem:[#allocation2] sm:$0xff] }
  0xd4   :  { %v117_v16 = vadd.f32 %v189_v13, %v108_v15 }
  0xd6   :  { %v123_v17 = vadd.f32 %v198_v14, %v117_v16 }
  0xd7   :  { %v109_v19 = vld [vmem:[#allocation2 + $0x8] sm:$0xff] }
  0xd8   :  { %v125_v20 = vsel %vm28_vm0, %v123_v17, 0.0  ;;  %v118_v21 = vadd.f32 %v189_v13, %v109_v19 }
  0xd9   :  { %126 = vadd.xlane.f32.xlu0 %v125_v20 }
  0xda   :  { %v124_v22 = vadd.f32 %v199_v18, %v118_v21 }
  0xdc   :  { %v128_v23 = vsel %vm28_vm0, %v124_v22, 0.0 }
  0xdd   :  { %129 = vadd.xlane.f32.xlu0 %v128_v23 }
 0x162   :  { %v127_v24 = vpop.xlane.xlu0 %126 }
 0x163   :  { %v132_v25 = vmul.f32 0.03125, %v127_v24 }
 0x165   :  { %v134_v26 = vsub.f32 %v123_v17, %v132_v25 }
 0x166   :  { %v130_v27 = vpop.xlane.xlu0 %129 }
 0x167   :  { %v133_v28 = vmul.f32 0.03125, %v130_v27  ;;  %v136_v29 = vmul.f32 %v134_v26, %v134_v26 }
 0x169   :  { %v135_v30 = vsub.f32 %v124_v22, %v133_v28  ;;  %v138_v31 = vsel %vm28_vm0, %v136_v29, 0.0 }
 0x16a   :  { %139 = vadd.xlane.f32.xlu1 %v138_v31 }
 0x16b   :  { %v137_v32 = vmul.f32 %v135_v30, %v135_v30 }
 0x16d   :  { %v141_v33 = vsel %vm28_vm0, %v137_v32, 0.0 }
 0x16e   :  { %142 = vadd.xlane.f32.xlu1 %v141_v33 }
 0x1f3   :  { %v140_v34 = vpop.xlane.xlu1 %139 }
 0x1f4   :  { %v144_v35 = vmul.f32 0.03125, %v140_v34 }
 0x1f6   :  { %v146_v36 = vadd.f32 1e-12, %v144_v35 }
 0x1f7   :  { %v143_v37 = vpop.xlane.xlu1 %142 }
 0x1f8   :  { %216 = vrsqrt.f32 %v146_v36  ;;  %v145_v38 = vmul.f32 0.03125, %v143_v37 }
 0x1fa   :  { %v147_v39 = vadd.f32 1e-12, %v145_v38 }
 0x1fc   :  { %218 = vrsqrt.f32 %v147_v39 }
 0x205   :  { %v217_v40 = vpop.eup %216 }
 0x206   :  { %v150_v42 = vmul.f32 %v217_v40, %v134_v26 }
 0x208   :  { %v159_v44 = vmul.f32 %v190_v41, %v150_v42 }
 0x209   :  { %v219_v45 = vpop.eup %218 }
 0x20a   :  { %v168_v46 = vadd.f32 %v191_v43, %v159_v44  ;;  %v151_v47 = vmul.f32 %v219_v45, %v135_v30 }
 0x20c   :  { %v194_v48 = vpack.c.bf16 %v168_v46, %v168_v46  ;;  %v160_v49 = vmul.f32 %v190_v41, %v151_v47 }
 0x20e   :  { %179 = vst.msk [vmem:[%s299_s6] sm:$0xf] %vm178_vm2, %v194_v48  ;;  %v169_v50 = vadd.f32 %v191_v43, %v160_v49 }
 0x210   :  { %v195_v51 = vpack.c.bf16 %v169_v50, %v169_v50 }
 0x212   :  { %180 = vst.msk [vmem:[%s299_s6 + $0x4] sm:$0xf] %vm178_vm2, %v195_v51 }

// kernel: bert_classifier_forward.12
= control target key start
LH: loop header
LB: loop body
LE: loop exit
PB: predicated region body
PF: predicated region fallthrough
CT: control target
= control target key end

     0   :  { %s855_s15 = smov 0   ;;  %s857_s16 = smov 0   ;;  %s923_s0 = inlined_call_operand.vmem [shape: bf16[3,2,8,32], index: 0, kind: input, shape index: {}, may-alias: {0,1,2}]   ;;  %s924_s1 = inlined_call_operand.vmem [shape: bf16[3,2,8,32], index: 1, kind: input, shape index: {}, may-alias: {0,1,2}]   ;;  %s925_s2 = inlined_call_operand.vmem [shape: bf16[3,2,8,32], index: 2, kind: input, shape index: {}, may-alias: {0,1,2}]   ;;  %s926_s3 = inlined_call_operand.vmem [shape: f32[2,1,8], index: 3, kind: input, shape index: {}]   ;;  %s927_s4 = inlined_call_operand.vmem [shape: bf16[2,8,32], index: 4, kind: output, shape index: {}]  }
   0x1   :  { %s859_s17 = smov 0  }
   0x2 LB: > { %s33_s18 = sadd.s32 1, %s820_s16  ;;  %p714_p0 = scmp.ge.s32.totalorder %s824_s17, 1  ;;  %s824_s17 = sphi %s859_s17, %s14_s17   ;;  %s820_s16 = sphi %s857_s16, %s929_s16   ;;  %s816_s15 = sphi %s855_s15, %s928_s15  }
   0x3   : > { %p35_p1 = scmp.ge.s32.totalorder %s33_s18, 2  ;;  %p232_p2 = scmp.lt.s32.totalorder %s824_s17, 3 }
   0x5   : > { %s931_s18 = smov (%p35_p1, %s33_s18), 0  ;;  %p233_p3 = pnand %p714_p0, %p232_p2 }
   0x6   : > { %p287_p4 = scmp.lt.s32.totalorder (!%p233_p3), %s816_s15, 1  ;;  %s828_s29 = smov (!%p233_p3), 112  }
   0x7   : > { %236 = sbr.rel (%p233_p3) target bundleno = 1366 (0x556), region = 36  ;;  %s829_s7 = smov (!%p233_p3), 16  }
   0xc   : > { %v826_v0 = vmov 0.0   ;;  %vm827_vm0 = vmmov 0   ;;  %s933_s15 = smov (!%p287_p4, %s816_s15), 1  ;;  %vm331_vm1 = vcmask 130048   ;;  %vm386_vm2 = vcmask 64512  }
   0xd   : > { %739 = vmatprep.subr.bf16.mxu0 %v826_v0  ;;  %741 = vmatprep.mubr.msk.bf16.mxu0 %vm827_vm0, %v826_v0  ;;  %s875_s19 = sshll.u32 %s933_s15, 2  ;;  %s315_s28 = scalar_lea.vmem %s926_s3, %s933_s15  ;;  %vm402_vm3 = vcmask 1043456   ;;  %vm573_vm4 = vcmask 257024  }
   0xe   : > { %745 = vmatprep.subr.bf16.mxu1 %v826_v0  ;;  %747 = vmatprep.mubr.msk.bf16.mxu1 %vm827_vm0, %v826_v0  ;;  %s642_s22 = scalar_lea.vmem %s924_s1, %s875_s19  ;;  %s296_s25 = scalar_lea.vmem %s923_s0, %s875_s19  ;;  %v722_v5 = vld [vmem:[%s315_s28] ss:$0 sm:$0xff] }
   0xf   : > { %v719_v1 = vld [vmem:[%s642_s22 + $0x8] sm:$0xf]  ;;  %v327_v3 = vld [vmem:[%s296_s25] sm:$0xf]  ;;  %s646_s6 = scalar_lea.vmem %s925_s2, %s875_s19  ;;  %s325_s10 = scalar_lea.vmem %s927_s4, %s875_s19 }
  0x10   : > { %v336_v2 = vsel %vm331_vm1, %v719_v1, 0  ;;  %v725_v12 = vcombine.low %v719_v1, %v719_v1  ;;  %v724_v13 = vcombine.low %v327_v3, %v327_v3  ;;  %v720_v19 = vld [vmem:[%s646_s6 + $0x10] sm:$0xf] }
  0x11   : > { %740 = vmatpush3.bf16.xpose.msra.mxu0 %v336_v2  ;;  %v404_v20 = vsel %vm402_vm3, %v720_v19, 0  ;;  %v727_v39 = vcombine.low %v720_v19, %v720_v19 }
  0x12   : > { %757 = vmatprep.subr.bf16.mxu0 %v826_v0  ;;  %454 = vrot.lane.b32.xlu1 %v725_v12, %s828_s29 }
  0x13   : > { %746 = vmatpush3.bf16.msra.mxu1 %v404_v20 }
  0x14   : > { %751 = vmatprep.subr.bf16.mxu1 %v826_v0 }
  0x16   : > { %449 = vrot.lane.b32.xlu1 %v724_v13, %s828_s29 }
  0x18   : > { %742 = vmatmul.mubr.msk.bf16.vlgmr.msra.gmra.mxu0 %vm331_vm1, %v327_v3 }
  0x19   : > { %759 = vmatprep.mubr.msk.bf16.mxu0 %vm827_vm0, %v826_v0 }
  0x84   : > { %v455_v23 = vpop.permute.xlu1 %454 }
  0x85   : > { %v460_v25 = vsel %vm331_vm1, %v455_v23, 0 }
  0x88   : > { %v450_v27 = vpop.permute.xlu1 %449 }
  0xd8   : > { %v372_v4 = vpop.f32.mrf.mxu0 }
  0xd9   : > { %v378_v6 = vmul.f32 0.25, %v372_v4 }
  0xda   : > { %v743_v7 = vpop.f32.mrf.mxu0 }
  0xdb   : > { %v385_v8 = vadd.f32 %v722_v5, %v378_v6 }
  0xdc   : > { %v375_v9 = vpop.f32.mrf.mxu0 }
  0xdd   : > { %v387_v10 = vsel %vm386_vm2, %v385_v8, -inf }
  0xde   : > { %388 = vmax.xlane.f32.xlu0 %v387_v10  ;;  %v744_v11 = vpop.f32.mrf.mxu0 }
 0x167   : > { %v389_v14 = vpop.xlane.xlu0 %388 }
 0x168   : > { %v390_v15 = vsub.f32 %v385_v8, %v389_v14 }
 0x16a   : > { %v391_v16 = vmul.f32 1.442695, %v390_v15 }
 0x16c   : > { %794 = vpow2.f32 %v391_v16 }
 0x179   : > { %v795_v17 = vpop.eup %794 }
 0x17a   : > { %v393_v18 = vsel %vm386_vm2, %v795_v17, 0.0 }
 0x17b   : > { %394 = vadd.xlane.f32.xlu0 %v393_v18 }
 0x204   : > { %v395_v21 = vpop.xlane.xlu0 %394 }
 0x205   : > { %796 = vrcp.f32 %v395_v21 }
 0x212   : > { %v797_v22 = vpop.eup %796 }
 0x213   : > { %v397_v24 = vmul.f32 %v797_v22, %v795_v17 }
 0x215   : > { %v398_v26 = vpack.c.bf16 %v397_v24, %v397_v24 }
 0x217   : > { %748 = vmatmul.mubr.msk.bf16.vlgmr.msra.gmra.mxu1 %vm386_vm2, %v398_v26 }
 0x218   : > { %752 = vmatpush3.bf16.xpose.msra.mxu1 %v460_v25  ;;  %753 = vmatprep.mubr.msk.bf16.mxu1 %vm827_vm0, %v826_v0 }
 0x21f   : > { %754 = vmatmul.mubr.msk.bf16.vlgmr.msra.gmra.mxu1 %vm331_vm1, %v450_v27 }
 0x2d7   : > { %v440_v28 = vpop.f32.mrf.mxu1 }
 0x2d9   : > { %v749_v29 = vpop.f32.mrf.mxu1 }
 0x2db   : > { %v443_v30 = vpop.f32.mrf.mxu1 }
 0x2dd   : > { %v750_v31 = vpop.f32.mrf.mxu1 }
 0x2df   : > { %v496_v32 = vpop.f32.mrf.mxu1 }
 0x2e0   : > { %v502_v33 = vmul.f32 0.25, %v496_v32 }
 0x2e1   : > { %v755_v34 = vpop.f32.mrf.mxu1 }
 0x2e2   : > { %v503_v35 = vadd.f32 %v722_v5, %v502_v33 }
 0x2e3   : > { %v499_v36 = vpop.f32.mrf.mxu1 }
 0x2e4   : > { %v504_v37 = vsel %vm386_vm2, %v503_v35, -inf }
 0x2e5   : > { %505 = vmax.xlane.f32.xlu0 %v504_v37  ;;  %v756_v38 = vpop.f32.mrf.mxu1 }
 0x2fb   : > { %519 = vrot.lane.b32.xlu0 %v727_v39, %s828_s29 }
 0x36e   : > { %v506_v40 = vpop.xlane.xlu0 %505 }
 0x36f   : > { %v507_v41 = vsub.f32 %v503_v35, %v506_v40 }
 0x371   : > { %v508_v42 = vmul.f32 1.442695, %v507_v41 }
 0x372   : > { %v520_v45 = vpop.permute.xlu0 %519 }
 0x373   : > { %798 = vpow2.f32 %v508_v42  ;;  %v525_v46 = vsel %vm402_vm3, %v520_v45, 0 }
 0x374   : > { %758 = vmatpush3.bf16.msra.mxu0 %v525_v46 }
 0x380   : > { %v799_v43 = vpop.eup %798 }
 0x381   : > { %v510_v44 = vsel %vm386_vm2, %v799_v43, 0.0 }
 0x382   : > { %511 = vadd.xlane.f32.xlu1 %v510_v44 }
 0x40b   : > { %v512_v47 = vpop.xlane.xlu1 %511 }
 0x40c   : > { %800 = vrcp.f32 %v512_v47 }
 0x419   : > { %v801_v48 = vpop.eup %800 }
 0x41a   : > { %v514_v49 = vmul.f32 %v801_v48, %v799_v43 }
 0x41c   : > { %v515_v50 = vpack.c.bf16 %v514_v49, %v514_v49 }
 0x41e   : > { %760 = vmatmul.mubr.msk.bf16.vlgmr.msra.gmra.mxu0 %vm386_vm2, %v515_v50 }
 0x4de   : > { %v561_v51 = vpop.f32.mrf.mxu0 }
 0x4df   : > { %568 = vrot.lane.b32.xlu0 %v561_v51, %s829_s7 }
 0x4e0   : > { %v761_v52 = vpop.f32.mrf.mxu0 }
 0x4e2   : > { %v564_v53 = vpop.f32.mrf.mxu0 }
 0x4e4   : > { %v762_v54 = vpop.f32.mrf.mxu0 }
 0x551   : > { %v569_v55 = vpop.permute.xlu0 %568 }
 0x552   : > { %v571_v56 = vsel %vm331_vm1, %v440_v28, %v569_v55 }
 0x553   : > { %v572_v57 = vpack.c.bf16 %v571_v56, %v571_v56 }
 0x555   : > { %574 = vst.msk [vmem:[%s325_s10] sm:$0xf] %vm573_vm4, %v572_v57 }
 0x556 PF: > { %s14_s17 = sadd.s32 1, %s824_s17   ;;  %s928_s15 = smov %s820_s16 }
 0x557   : > { %p11_p5 = scmp.ge.s32.totalorder %s14_s17, 4   ;;  %s929_s16 = smov %s931_s18 }
 0x559   :  { %13 = sbr.rel (!%p11_p5) target bundleno = 2 (0x2), region = 75 }

// kernel: bert_classifier_forward.19
= control target key start
LH: loop header
LB: loop body
LE: loop exit
PB: predicated region body
PF: predicated region fallthrough
CT: control target
= control target key end

     0   :  { %v271_v1 = vmov 0.0   ;;  %vm272_vm0 = vmmov 0   ;;  %s342_s0 = inlined_call_operand.vmem [shape: f32[2,32], index: 0, kind: input, shape index: {}]   ;;  %s343_s1 = inlined_call_operand.vmem [shape: f32[32,32], index: 1, kind: input, shape index: {}]   ;;  %s344_s2 = inlined_call_operand.vmem [shape: f32[1,32], index: 2, kind: input, shape index: {}]   ;;  %s345_s3 = inlined_call_operand.vmem [shape: f32[32,3], index: 3, kind: input, shape index: {}]   ;;  %s346_s4 = inlined_call_operand.vmem [shape: f32[1,3], index: 4, kind: input, shape index: {}]   ;;  %s347_s5 = inlined_call_operand.hbm [shape: f32[2,3], index: 5, kind: output, shape index: {}]  }
   0x1   :  { %v25_v0 = vld [vmem:[%s343_s1 + $0x18] sm:$0xff]  ;;  %222 = vmatprep.subr.mxu0 %v271_v1  ;;  %v24_v2 = vld [vmem:[%s343_s1 + $0x10] sm:$0xff]  ;;  %230 = vmatprep.mubr.msk.f32.mxu0 %vm272_vm0, %v271_v1 }
   0x2   :  { %223 = vmatpush3.msra.mxu0 %v25_v0  ;;  %233 = vmatprep.subr.mxu1 %v271_v1 }
   0x3   :  { %10 = vsyncpa [#allocation3], 0  ;;  %224 = vmatprep.subr.mxu0 %v271_v1  ;;  %v23_v3 = vld [vmem:[%s343_s1 + $0x8] sm:$0xff]  ;;  %241 = vmatprep.mubr.msk.f32.mxu1 %vm272_vm0, %v271_v1  ;;  %v22_v4 = vld [vmem:[%s343_s1] sm:$0xff]  ;;  %vm33_vm1 = vcmask 261120   ;;  %s273_s13 = smov [#allocation2]  }
   0x4   :  { %225 = vmatpush3.msra.mxu0 %v24_v2  ;;  %v21_v5 = vld [vmem:[%s342_s0] sm:$0x3]  ;;  %v111_v6 = vld [vmem:[%s345_s3 + $0x18] sm:$0xff]  ;;  %v110_v7 = vld [vmem:[%s345_s3 + $0x10] sm:$0xff]  ;;  %vm192_vm2 = vcmask 17408  }
   0x5   :  { %226 = vmatprep.subr.mxu0 %v271_v1  ;;  %234 = vmatpush3.msra.mxu1 %v111_v6  ;;  %v109_v8 = vld [vmem:[%s345_s3 + $0x8] sm:$0xff]  ;;  %v108_v9 = vld [vmem:[%s345_s3] sm:$0xff]  ;;  %s200_s3 = sshll.u32 %s273_s13, 4  ;;  %s201_s3 = int_to_ptr.vmem [resolvable:$true] %s200_s3 }
   0x6   :  { %227 = vmatpush3.msra.mxu0 %v23_v3  ;;  %235 = vmatprep.subr.mxu1 %v271_v1  ;;  %v208_v10 = vld [vmem:[%s344_s2] ss:$0 sm:$0xff]  ;;  %s249_s2 = scalar_lea.vmem %s201_s3, 32  ;;  %p254_p1 = scmp.lt.s32.totalorder %s201_s3, %s201_s3 }
   0x7   :  { %228 = vmatprep.subr.mxu0 %v271_v1  ;;  %236 = vmatpush3.msra.mxu1 %v110_v7  ;;  %v210_v15 = vld [vmem:[%s346_s4] ss:$0 sm:$0xff]  ;;  %p250_p0 = scmp.ne.s32.totalorder %s201_s3, %s249_s2  ;;  %p255_p2 = scmp.lt.s32.totalorder %s249_s2, %s249_s2 }
   0x8   :  { %229 = vmatpush3.msra.mxu0 %v22_v4  ;;  %237 = vmatprep.subr.mxu1 %v271_v1 }
   0x9   :  { %231 = vmatmul.mubr.msk.f32.vlgmr.msra.gmra.mxu0 %vm33_vm1, %v21_v5  ;;  %238 = vmatpush3.msra.mxu1 %v109_v8  ;;  %p256_p3 = por %p255_p2, %p254_p1 }
   0xa   :  { %239 = vmatprep.subr.mxu1 %v271_v1 }
   0xb   :  { %240 = vmatpush3.msra.mxu1 %v108_v9  ;;  %p257_p4 = pnand %p256_p3, %p250_p0 }
  0xc9   :  { %v103_v11 = vpop.f32.mrf.mxu0 }
  0xca   :  { %v104_v12 = vadd.f32 %v208_v10, %v103_v11 }
  0xcb   :  { %v232_v13 = vpop.f32.mrf.mxu0 }
  0xcc   :  { %247 = vtanh.f32 %v104_v12 }
  0xd9   :  { %v248_v14 = vpop.eup %247 }
  0xda   :  { %242 = vmatmul.mubr.msk.f32.vlgmr.msra.gmra.mxu1 %vm33_vm1, %v248_v14 }
 0x19a   :  { %v188_v16 = vpop.f32.mrf.mxu1 }
 0x19b   :  { %v189_v17 = vadd.f32 %v210_v15, %v188_v16 }
 0x19c   :  { %v243_v18 = vpop.f32.mrf.mxu1 }
 0x19d   :  { %193 = vst.msk [vmem:[#allocation2] sm:$0x3] %vm192_vm2, %v189_v17 }
 0x19e   :  { %260 = shalt.err (!%p257_p4)
}
 0x19f   :  { %203 = dma.vmem_to_hbm [thread:$0]  %s201_s3, 32, %s347_s5, [#allocation3]  }
 0x1a0   :  { %269 = dma.done.wait [#allocation3], 32  }
 0x1a1   :  { %270 = vsyncadd [#allocation3], 4294967264 }
 0x1a2   :  { %207 = vsyncpa [#allocation3], 1 }

// kernel: bert_classifier_forward.14
= control target key start
LH: loop header
LB: loop body
LE: loop exit
PB: predicated region body
PF: predicated region fallthrough
CT: control target
= control target key end

     0   :  { %vm34_vm0 = vcmask 261120   ;;  %v360_v0 = vmov 0.0   ;;  %vm361_vm1 = vmmov 0   ;;  %vm165_vm2 = vcmask 523264   ;;  %s458_s1 = inlined_call_operand.vmem [shape: bf16[32,64], index: 1, kind: input, shape index: {}]   ;;  %s459_s0 = inlined_call_operand.vmem [shape: bf16[16,32], index: 0, kind: input, shape index: {}, may-alias: {0,5}]   ;;  %s460_s3 = inlined_call_operand.vmem [shape: bf16[64,32], index: 3, kind: input, shape index: {}]   ;;  %s461_s2 = inlined_call_operand.vmem [shape: f32[1,64], index: 2, kind: input, shape index: {}]   ;;  %s462_s5 = inlined_call_operand.vmem [shape: bf16[16,32], index: 5, kind: input, shape index: {}, may-alias: {0,5}]   ;;  %s463_s4 = inlined_call_operand.vmem [shape: f32[1,32], index: 4, kind: input, shape index: {}]   ;;  %s464_s6 = inlined_call_operand.vmem [shape: f32[1,32], index: 6, kind: input, shape index: {}]   ;;  %s465_s7 = inlined_call_operand.vmem [shape: f32[1,32], index: 7, kind: input, shape index: {}]   ;;  %s466_s8 = inlined_call_operand.vmem [shape: bf16[16,32], index: 8, kind: output, shape index: {}]  }
   0x1   :  { %323 = vmatprep.subr.bf16.mxu0 %v360_v0  ;;  %v345_v1 = vld [vmem:[%s458_s1 + $0x8] sm:$0xff]   ;;  %327 = vmatprep.mubr.msk.bf16.mxu0 %vm361_vm1, %v360_v0  ;;  %35 = vst.msk [vmem:[#allocation2] sm:$0xff] %vm34_vm0, %v360_v0  ;;  %36 = vst.msk [vmem:[#allocation2 + $0x8] sm:$0xff] %vm34_vm0, %v360_v0  ;;  %v346_v2 = vld [vmem:[%s458_s1] sm:$0xff]   ;;  %vm287_vm3 = vcmask 257024  }
   0x2   :  { %331 = vmatprep.subr.bf16.mxu1 %v360_v0  ;;  %339 = vmatprep.mubr.msk.bf16.mxu1 %vm361_vm1, %v360_v0  ;;  %v347_v3 = vld [vmem:[%s459_s0] sm:$0xff]   ;;  %v348_v4 = vld [vmem:[%s460_s3 + $0x18] sm:$0xff]   ;;  %v349_v5 = vld [vmem:[%s460_s3 + $0x10] sm:$0xff]  }
   0x3   :  { %324 = vmatpush3.bf16.msra.mxu0 %v345_v1  ;;  %332 = vmatpush3.bf16.msra.mxu1 %v348_v4  ;;  %v350_v6 = vld [vmem:[%s460_s3 + $0x8] sm:$0xff]   ;;  %v351_v7 = vld [vmem:[%s460_s3] sm:$0xff]  }
   0x4   :  { %325 = vmatprep.subr.bf16.mxu0 %v360_v0  ;;  %333 = vmatprep.subr.bf16.mxu1 %v360_v0  ;;  %v294_v8 = vld [vmem:[%s461_s2] ss:$0 sm:$0xff] }
   0x5   :  { %v312_v42 = vld [vmem:[%s462_s5] sm:$0xff]  }
   0x6   :  { %v304_v43 = vld [vmem:[%s463_s4] ss:$0 sm:$0xff]  ;;  %v313_v44 = vunpack.c.l.bf16 %v312_v42  ;;  %v314_v48 = vunpack.c.h.bf16 %v312_v42 }
   0x7   :  { %326 = vmatpush3.bf16.msra.mxu0 %v346_v2  ;;  %334 = vmatpush3.bf16.msra.mxu1 %v349_v5 }
   0x8   :  { %335 = vmatprep.subr.bf16.mxu1 %v360_v0  ;;  %v130_v34 = vld [vmem:[#allocation2] sm:$0xff]  ;;  %v131_v38 = vld [vmem:[#allocation2 + $0x8] sm:$0xff] }
   0xa   :  { %328 = vmatmul.mubr.msk.bf16.vlgmr.msra.gmra.mxu0 %vm34_vm0, %v347_v3 }
   0xb   :  { %336 = vmatpush3.bf16.msra.mxu1 %v350_v6 }
   0xc   :  { %337 = vmatprep.subr.bf16.mxu1 %v360_v0 }
   0xf   :  { %338 = vmatpush3.bf16.msra.mxu1 %v351_v7  ;;  %v305_v7 = vld [vmem:[%s464_s6] ss:$0 sm:$0xff] }
  0xca   :  { %v105_v9 = vpop.f32.mrf.mxu0 }
  0xcb   :  { %v106_v10 = vadd.f32 %v294_v8, %v105_v9  ;;  %v306_v9 = vld [vmem:[%s465_s7] ss:$0 sm:$0xff] }
  0xcc   :  { %v329_v11 = vpop.f32.mrf.mxu0 }
  0xcd   :  { %v112_v12 = vmul.f32 %v106_v10, %v106_v10 }
  0xce   :  { %v108_v13 = vpop.f32.mrf.mxu0 }
  0xcf   :  { %v114_v14 = vmul.f32 %v112_v12, %v106_v10  ;;  %v109_v15 = vadd.f32 %v294_v8, %v108_v13 }
  0xd0   :  { %v330_v16 = vpop.f32.mrf.mxu0 }
  0xd1   :  { %v116_v17 = vmul.f32 0.044715, %v114_v14  ;;  %v113_v18 = vmul.f32 %v109_v15, %v109_v15 }
  0xd3   :  { %v118_v19 = vadd.f32 %v116_v17, %v106_v10  ;;  %v115_v20 = vmul.f32 %v113_v18, %v109_v15 }
  0xd5   :  { %v120_v21 = vmul.f32 0.7978846, %v118_v19  ;;  %v117_v22 = vmul.f32 0.044715, %v115_v20 }
  0xd7   :  { %352 = vtanh.f32 %v120_v21  ;;  %v119_v23 = vadd.f32 %v117_v22, %v109_v15 }
  0xd9   :  { %v121_v24 = vmul.f32 0.7978846, %v119_v23 }
  0xdb   :  { %354 = vtanh.f32 %v121_v24 }
  0xe4   :  { %v353_v25 = vpop.eup %352 }
  0xe5   :  { %v124_v26 = vadd.f32 1.0, %v353_v25 }
  0xe7   :  { %v126_v28 = vmul.f32 0.5, %v124_v26 }
  0xe8   :  { %v355_v27 = vpop.eup %354 }
  0xe9   :  { %v125_v29 = vadd.f32 1.0, %v355_v27  ;;  %v128_v31 = vmul.f32 %v126_v28, %v106_v10 }
  0xeb   :  { %v127_v30 = vmul.f32 0.5, %v125_v29 }
  0xed   :  { %v129_v32 = vmul.f32 %v127_v30, %v109_v15 }
  0xef   :  { %v132_v33 = vpack.c.bf16 %v129_v32, %v128_v31 }
  0xf1   :  { %340 = vmatmul.mubr.msk.bf16.vlgmr.msra.gmra.mxu1 %vm165_vm2, %v132_v33 }
 0x1b1   :  { %v203_v35 = vpop.f32.mrf.mxu1 }
 0x1b2   :  { %v210_v36 = vadd.f32 %v203_v35, %v130_v34 }
 0x1b3   :  { %v341_v37 = vpop.f32.mrf.mxu1 }
 0x1b4   :  { %212 = vst.msk [vmem:[#allocation2] sm:$0xff] %vm34_vm0, %v210_v36 }
 0x1b5   :  { %v206_v39 = vpop.f32.mrf.mxu1 }
 0x1b6   :  { %v211_v40 = vadd.f32 %v206_v39, %v131_v38 }
 0x1b7   :  { %v342_v41 = vpop.f32.mrf.mxu1 }
 0x1b8   :  { %213 = vst.msk [vmem:[#allocation2 + $0x8] sm:$0xff] %vm34_vm0, %v211_v40 }
 0x1bb   :  { %v217_v45 = vld [vmem:[#allocation2] sm:$0xff] }
 0x1bc   :  { %v226_v46 = vadd.f32 %v304_v43, %v217_v45 }
 0x1be   :  { %v232_v47 = vadd.f32 %v313_v44, %v226_v46 }
 0x1bf   :  { %v218_v49 = vld [vmem:[#allocation2 + $0x8] sm:$0xff] }
 0x1c0   :  { %v234_v50 = vsel %vm34_vm0, %v232_v47, 0.0  ;;  %v227_v51 = vadd.f32 %v304_v43, %v218_v49 }
 0x1c1   :  { %235 = vadd.xlane.f32.xlu0 %v234_v50 }
 0x1c2   :  { %v233_v52 = vadd.f32 %v314_v48, %v227_v51 }
 0x1c4   :  { %v237_v53 = vsel %vm34_vm0, %v233_v52, 0.0 }
 0x1c5   :  { %238 = vadd.xlane.f32.xlu0 %v237_v53 }
 0x24a   :  { %v236_v54 = vpop.xlane.xlu0 %235 }
 0x24b   :  { %v241_v55 = vmul.f32 0.03125, %v236_v54 }
 0x24d   :  { %v243_v56 = vsub.f32 %v232_v47, %v241_v55 }
 0x24e   :  { %v239_v57 = vpop.xlane.xlu0 %238 }
 0x24f   :  { %v242_v58 = vmul.f32 0.03125, %v239_v57  ;;  %v245_v59 = vmul.f32 %v243_v56, %v243_v56 }
 0x251   :  { %v244_v60 = vsub.f32 %v233_v52, %v242_v58  ;;  %v247_v61 = vsel %vm34_vm0, %v245_v59, 0.0 }
 0x252   :  { %248 = vadd.xlane.f32.xlu1 %v247_v61 }
 0x253   :  { %v246_v62 = vmul.f32 %v244_v60, %v244_v60 }
 0x255   :  { %v250_v63 = vsel %vm34_vm0, %v246_v62, 0.0 }
 0x256   :  { %251 = vadd.xlane.f32.xlu1 %v250_v63 }
 0x2db   :  { %v249_v0 = vpop.xlane.xlu1 %248 }
 0x2dc   :  { %v253_v1 = vmul.f32 0.03125, %v249_v0 }
 0x2de   :  { %v255_v2 = vadd.f32 1e-12, %v253_v1 }
 0x2df   :  { %v252_v3 = vpop.xlane.xlu1 %251 }
 0x2e0   :  { %356 = vrsqrt.f32 %v255_v2  ;;  %v254_v4 = vmul.f32 0.03125, %v252_v3 }
 0x2e2   :  { %v256_v5 = vadd.f32 1e-12, %v254_v4 }
 0x2e4   :  { %358 = vrsqrt.f32 %v256_v5 }
 0x2ed   :  { %v357_v6 = vpop.eup %356 }
 0x2ee   :  { %v259_v8 = vmul.f32 %v357_v6, %v243_v56 }
 0x2f0   :  { %v268_v10 = vmul.f32 %v305_v7, %v259_v8 }
 0x2f1   :  { %v359_v11 = vpop.eup %358 }
 0x2f2   :  { %v277_v12 = vadd.f32 %v306_v9, %v268_v10  ;;  %v260_v13 = vmul.f32 %v359_v11, %v244_v60 }
 0x2f4   :  { %v309_v14 = vpack.c.bf16 %v277_v12, %v277_v12  ;;  %v269_v15 = vmul.f32 %v305_v7, %v260_v13 }
 0x2f6   :  { %288 = vst.msk [vmem:[%s466_s8] sm:$0xf] %vm287_vm3, %v309_v14  ;;  %v278_v16 = vadd.f32 %v306_v9, %v269_v15 }
 0x2f8   :  { %v310_v17 = vpack.c.bf16 %v278_v16, %v278_v16 }
 0x2fa   :  { %289 = vst.msk [vmem:[%s466_s8 + $0x4] sm:$0xf] %vm287_vm3, %v310_v17 }

</bundles_post_ra>
